<compile_context>
chip_gen: v6e
topology: v6e:2x2x1
jax: 0.10.0
libtpu: 0.0.40
codegen_flags: <defaults>
</compile_context>

<pallas_src>
import functools
import math

import numpy as np
import jax
import jax.numpy as jnp
from jax.experimental import pallas as pl
from jax.experimental.pallas import tpu as pltpu


MM_DTYPE = jnp.bfloat16          # MXU input / activation dtype; accumulation stays f32.


def _vmem_and_tiles():
    """Generation-dependent VMEM budget + tile prefs (conservative fallback for v7x/unknown)."""
    try:
        info = pltpu.get_tpu_info()
        vmem = getattr(info, "vmem_capacity_bytes", None)
    except Exception:
        vmem = None
    if vmem is not None and vmem >= 100 * 1024 * 1024:     # v5e / v6e: 128 MiB physical
        return 96 * 1024 * 1024, 512, 512, 512
    return 48 * 1024 * 1024, 256, 256, 512                 # v7x (64 MiB) or unknown


VMEM_LIMIT_BYTES, TM_PREF, TN_PREF, TK_PREF = _vmem_and_tiles()


def _round_up(x, m):
    return ((x + m - 1) // m) * m


def _tile(dim, pref, align):
    """Largest tile <= pref that is a multiple of `align` and divides `dim`."""
    # TODO(synk): for awkward (non-multiple-of-align) dims this falls back to the full dim;
    # production code should pad M/N/K up front so tile prefs always hold (v7x VMEM budget).
    if dim <= pref or dim % align:
        return dim
    t = (pref // align) * align
    while dim % t:
        t -= align
    return t


# ------------- fused tiled linear kernel (LN + matmul + bias + GELU + residual) -------------

def _linear_kernel(*refs, activation, has_bias, has_ln, has_res, eps):
    it = iter(refs)
    x_ref = next(it)
    w_ref = next(it)
    b_ref = next(it) if has_bias else None
    lnw_ref = next(it) if has_ln else None
    lnb_ref = next(it) if has_ln else None
    res_ref = next(it) if has_res else None
    o_ref = next(it)
    acc_ref = next(it)
    xln_ref = next(it) if has_ln else None     # (tm, K) bf16 cached LayerNorm'd LHS

    j = pl.program_id(1)
    k = pl.program_id(2)

    @pl.when(k == 0)
    def _():
        acc_ref[...] = jnp.zeros_like(acc_ref)

    if has_ln:
        # gk == 1 (full K row in one block). Compute LN only for the first output tile of
        # each row block; cache the bf16 result and reuse for j = 1..gn-1.
        @pl.when(j == 0)
        def _():
            xf = x_ref[...].astype(jnp.float32)
            mu = jnp.mean(xf, axis=-1, keepdims=True)
            var = jnp.mean(jnp.square(xf - mu), axis=-1, keepdims=True)
            xf = (xf - mu) * jax.lax.rsqrt(var + eps)
            xf = xf * lnw_ref[...].astype(jnp.float32) + lnb_ref[...].astype(jnp.float32)
            xln_ref[...] = xf.astype(xln_ref.dtype)
        lhs = xln_ref[...]
    else:
        lhs = x_ref[...]
        if lhs.dtype != w_ref.dtype:
            lhs = lhs.astype(w_ref.dtype)

    acc_ref[...] += jnp.dot(lhs, w_ref[...], preferred_element_type=jnp.float32)

    @pl.when(k == pl.num_programs(2) - 1)
    def _():
        out = acc_ref[...]
        if has_bias:
            out = out + b_ref[...].astype(jnp.float32)
        if activation == "gelu":
            # exact (erf-based) GELU to match torch.nn.GELU() default
            out = 0.5 * out * (1.0 + jax.lax.erf(out * (1.0 / math.sqrt(2.0))))
        if has_res:
            out = out + res_ref[...].astype(jnp.float32)
        o_ref[...] = out.astype(o_ref.dtype)


def fused_linear(x2d, w, b=None, *, ln_w=None, ln_b=None, residual=None,
                 activation="none", eps=1e-5, out_dtype=None):
    M, K = x2d.shape
    Nout = w.shape[1]
    has_ln = ln_w is not None
    out_dtype = x2d.dtype if out_dtype is None else out_dtype

    w = w.astype(MM_DTYPE)    # no-op if weights are already stored in bf16

    tm = _tile(M, TM_PREF, 8)
    tn = _tile(Nout, TN_PREF, 128)
    # TODO(synk): has_ln keeps the full K row in one block; for very large K on v7x, shrink tm
    # or split LN into a prelude kernel to stay inside the 64 MiB VMEM budget.
    tk = K if has_ln else _tile(K, TK_PREF, 128)
    gm, gn, gk = M // tm, Nout // tn, K // tk

    inputs = [x2d, w]
    in_specs = [pl.BlockSpec((tm, tk), lambda i, j, k: (i, k)),
                pl.BlockSpec((tk, tn), lambda i, j, k: (k, j))]
    if b is not None:
        inputs.append(b)
        in_specs.append(pl.BlockSpec((1, tn), lambda i, j, k: (0, j)))
    if has_ln:
        inputs += [ln_w, ln_b]
        in_specs += [pl.BlockSpec((1, tk), lambda i, j, k: (0, k)),
                     pl.BlockSpec((1, tk), lambda i, j, k: (0, k))]
    if residual is not None:
        inputs.append(residual)
        in_specs.append(pl.BlockSpec((tm, tn), lambda i, j, k: (i, j)))

    scratch = [pltpu.VMEM((tm, tn), jnp.float32)]
    if has_ln:
        scratch.append(pltpu.VMEM((tm, tk), MM_DTYPE))

    kernel = functools.partial(_linear_kernel, activation=activation,
                               has_bias=b is not None, has_ln=has_ln,
                               has_res=residual is not None, eps=eps)
    # LN result is cached per row-tile under pl.when(j == 0), so the j axis must stay on one
    # core -> "arbitrary" for LN layers; the row axis stays "parallel" for the megacore.
    dims = ("parallel", "arbitrary", "arbitrary") if has_ln \
        else ("parallel", "parallel", "arbitrary")

    return pl.pallas_call(
        kernel,
        out_shape=jax.ShapeDtypeStruct((M, Nout), out_dtype),
        grid_spec=pltpu.PrefetchScalarGridSpec(
            num_scalar_prefetch=0,
            grid=(gm, gn, gk),
            in_specs=in_specs,
            out_specs=pl.BlockSpec((tm, tn), lambda i, j, k: (i, j)),
            scratch_shapes=scratch),
        compiler_params=pltpu.CompilerParams(
            dimension_semantics=dims,
            vmem_limit_bytes=VMEM_LIMIT_BYTES),
    )(*inputs)


# ------------- MomAttention core kernel (query-tiled, lane-dense (tq, C) output) -------------

def _mom_attn_kernel(qkv_ref, kv_ref, o_ref, *, scale, num_heads, nb):
    # qkv_ref: (tq, 3C)      bf16 row block of the qkv projection (q in columns 0:C)
    # kv_ref : (1, Nb_pad, 3C) bf16 gathered candidate rows (k in C:2C, v in 2C:3C)
    # o_ref  : (tq, C)
    C = o_ref.shape[-1]
    hd = C // num_heads
    nb_pad = kv_ref.shape[1]

    # additive key-padding mask generated in-kernel from the static Nb (no mask DMA)
    lane = jax.lax.broadcasted_iota(jnp.int32, (1, nb_pad), 1)
    mask = jnp.where(lane < nb, 0.0, -1e30).astype(jnp.float32)

    for h in range(num_heads):                       # static unroll over heads
        qh = qkv_ref[:, h * hd:(h + 1) * hd]                              # (tq, hd) bf16
        kh = kv_ref[0, :, C + h * hd:C + (h + 1) * hd].astype(jnp.float32)  # (Nb_pad, hd)
        vh = kv_ref[0, :, 2 * C + h * hd:2 * C + (h + 1) * hd]            # (Nb_pad, hd) bf16

        # F.normalize(k, dim=-1) with eps=1e-12: x / max(||x||, eps) == x * rsqrt(max(||x||^2, eps^2))
        kn2 = jnp.sum(kh * kh, axis=-1, keepdims=True)
        kh = kh * jax.lax.rsqrt(jnp.maximum(kn2, 1e-24))

        qf = qh.astype(jnp.float32)
        qn = jnp.sum(qf * qf, axis=-1, keepdims=True)                     # (tq, 1)
        kn = jnp.sum(kh * kh, axis=-1)[None, :]                           # (1, Nb_pad)
        qk = jax.lax.dot_general(qh.astype(MM_DTYPE), kh.astype(MM_DTYPE),
                                 (((1,), (1,)), ((), ())),
                                 preferred_element_type=jnp.float32)      # (tq, Nb_pad)
        # -scale * squared euclidean distance, padded keys masked out
        s = -scale * (qn + kn - 2.0 * qk) + mask
        m = jnp.max(s, axis=-1, keepdims=True)
        p = jnp.exp(s - m)
        denom = jnp.sum(p, axis=-1, keepdims=True)
        attn = p * pl.reciprocal(denom, approx=True)
        pv = jnp.dot(attn.astype(MM_DTYPE), vh.astype(MM_DTYPE),
                     preferred_element_type=jnp.float32)
        # store each head directly into its output column slice (no concat / extra copies)
        o_ref[:, h * hd:(h + 1) * hd] = pv.astype(o_ref.dtype)


def mom_attention_core(qkv2d, kvg, *, B, N, C, scale, num_heads, nb, tq_pref=256):
    Nb_pad = kvg.shape[1]
    tq = _tile(N, tq_pref, 8)
    nq = N // tq
    kernel = functools.partial(_mom_attn_kernel, scale=scale, num_heads=num_heads, nb=nb)
    return pl.pallas_call(
        kernel,
        grid=(B, nq),
        in_specs=[
            # q rows read straight from the qkv output; full 3C width keeps the block
            # lane-layout safe for any C (k/v columns of these rows ride along, unused).
            pl.BlockSpec((tq, 3 * C), lambda b, i: (b * nq + i, 0)),
            # gathered candidate rows; block index depends only on b -> stays resident
            # across all query tiles of the same batch (DMA skipped on revisit).
            pl.BlockSpec((1, Nb_pad, 3 * C), lambda b, i: (b, 0, 0)),
        ],
        out_specs=pl.BlockSpec((tq, C), lambda b, i: (b * nq + i, 0)),
        out_shape=jax.ShapeDtypeStruct((B * N, C), MM_DTYPE),
        compiler_params=pltpu.CompilerParams(
            dimension_semantics=("parallel", "parallel"),
            vmem_limit_bytes=VMEM_LIMIT_BYTES),
    )(qkv2d, kvg)


# ------------- Module logic (glue, all on-device & jittable) -------------

def divide_batch(N, K, outlier_fraction, seed=0):
    # Mirrors MomAttention.divide_batch (host-side numpy RNG), returns a (K, Nb) index array.
    # TODO(synk): the reference re-samples candidate index sets with global np.random on every
    # forward; here they are sampled once on the host (deterministic) and passed in.
    rng = np.random.RandomState(seed)
    init_size = int(N * (1 - outlier_fraction))
    density = np.ones(N) / N
    all_indices = np.arange(N)
    indices = []
    for _ in range(K):
        idx = rng.choice(a=all_indices, size=init_size, replace=False, p=density)
        indices.append(np.sort(idx))
    return np.stack(indices).astype(np.int32)


def mom_block_fn(x, params, idx_all, num_heads):
    # ls1/ls2 = Identity (init_values=None), drop_path/dropout = Identity (p=0.0)
    B, N, C = x.shape
    H = num_heads
    hd = C // H
    scale = hd ** (-0.5)
    K_blocks, Nb = idx_all.shape
    Nb_pad = _round_up(Nb, 128) if Nb >= 128 else _round_up(Nb, 16)

    x2d = x.reshape(B * N, C)

    # --- LN1 fused into the qkv projection (qkv_bias=False); bf16 activations out ---
    qkv2d = fused_linear(x2d, params["qkv_w"], None,
                         ln_w=params["ln1_w"], ln_b=params["ln1_b"],
                         out_dtype=MM_DTYPE)                                # (B*N, 3C)

    # --- on-device candidate-block selection via per-row reductions (no host sync) ---
    # sum_ij(-scale*||q_i - k_j||^2) = -scale*(Nb*S||q||^2 + N*S||k||^2 - 2*(S q)·(S k));
    # everything reduces to two (N,)-vectors + tiny gathers and an argsort.
    qkv3 = qkv2d.reshape(B, N, 3 * C)
    q4 = qkv3[..., :C].reshape(B, N, H, hd).astype(jnp.float32)
    k4 = qkv3[..., C:2 * C].reshape(B, N, H, hd).astype(jnp.float32)
    k4 = k4 / jnp.maximum(jnp.linalg.norm(k4, axis=-1, keepdims=True), 1e-12)
    Sq = jnp.sum(q4 * q4)                                                   # scalar
    qs = jnp.sum(q4, axis=1)                                                # (B, H, hd)
    t_cross = jnp.einsum("bhd,bnhd->n", qs, k4)                             # (N,)
    rows_sq = jnp.sum(k4 * k4, axis=(0, 2, 3))                              # (N,)
    cross = jnp.sum(jnp.take(t_cross, idx_all, axis=0), axis=1)             # (K,)
    Sk = jnp.sum(jnp.take(rows_sq, idx_all, axis=0), axis=1)                # (K,)
    likelihood = -scale * (Nb * Sq + N * Sk - 2.0 * cross)
    b_pos = jnp.argsort(likelihood)[K_blocks // 2]
    idx_sel = jnp.take(idx_all, b_pos, axis=0)                              # (Nb,) dynamic

    # single gather of the selected rows (q/k/v columns together), padded to a tile-friendly
    # static length; padded keys are masked in-kernel. k is normalized inside the kernel, so
    # no full-size normalized-k tensor is ever materialized.
    idx_pad = jnp.pad(idx_sel, (0, Nb_pad - Nb))
    kvg = jnp.take(qkv3, idx_pad, axis=1)                                   # (B, Nb_pad, 3C)

    attn2d = mom_attention_core(qkv2d, kvg, B=B, N=N, C=C,
                                scale=scale, num_heads=H, nb=Nb)            # (B*N, C) bf16

    # --- proj (+bias) with the residual add fused ---
    x2d = fused_linear(attn2d, params["proj_w"], params["proj_b"],
                       residual=x2d, out_dtype=MM_DTYPE)

    # --- LN2 + fc1 + bias + GELU fused; fc2 + bias + residual fused ---
    h = fused_linear(x2d, params["fc1_w"], params["fc1_b"],
                     ln_w=params["ln2_w"], ln_b=params["ln2_b"],
                     activation="gelu", out_dtype=MM_DTYPE)
    out2d = fused_linear(h, params["fc2_w"], params["fc2_b"],
                         residual=x2d, out_dtype=x.dtype)
    return out2d.reshape(B, N, C)


mom_block = jax.jit(mom_block_fn, static_argnames=("num_heads",))


def init_params(key, dim, mlp_ratio=4.0):
    hidden = int(dim * mlp_ratio)
    ks = jax.random.split(key, 8)
    s = 0.02
    # Matmul weights stored in bf16 (MXU input dtype): halves weight HBM DMA and VMEM tiles.
    # LN params and biases stay f32 (tiny; added to the f32 accumulator).
    return {
        "ln1_w": jnp.ones((1, dim), jnp.float32),
        "ln1_b": jnp.zeros((1, dim), jnp.float32),
        "qkv_w": (s * jax.random.normal(ks[0], (dim, 3 * dim), jnp.float32)).astype(MM_DTYPE),
        "proj_w": (s * jax.random.normal(ks[1], (dim, dim), jnp.float32)).astype(MM_DTYPE),
        "proj_b": s * jax.random.normal(ks[2], (1, dim), jnp.float32),
        "ln2_w": jnp.ones((1, dim), jnp.float32),
        "ln2_b": jnp.zeros((1, dim), jnp.float32),
        "fc1_w": (s * jax.random.normal(ks[3], (dim, hidden), jnp.float32)).astype(MM_DTYPE),
        "fc1_b": s * jax.random.normal(ks[4], (1, hidden), jnp.float32),
        "fc2_w": (s * jax.random.normal(ks[5], (hidden, dim), jnp.float32)).astype(MM_DTYPE),
        "fc2_b": s * jax.random.normal(ks[6], (1, dim), jnp.float32),
    }


if __name__ == "__main__":
    B, N, C, H = 2, 16, 32, 4        # dim=32, num_heads=4, head_dim=8, mlp hidden=128
    key = jax.random.PRNGKey(0)
    kx, kp = jax.random.split(key)
    x = jax.random.normal(kx, (B, N, C), jnp.float32)
    params = init_params(kp, C)

    # Host-side numpy RNG index sampling (mirrors torch module's np.random.choice), K=num_blocks=3.
    idx_all = jnp.asarray(divide_batch(N, K=3, outlier_fraction=0.05, seed=0))

    out = mom_block(x, params, idx_all, num_heads=H)
    out = jax.block_until_ready(out)

    assert out.shape == (B, N, C), out.shape
    assert bool(jnp.all(jnp.isfinite(out)))
    print("KERNEL_OK")
</pallas_src>

<mosaic_0001>
module attributes {stable_mosaic.version = 11 : i64} {
  func.func @_linear_kernel(%arg0: i32, %arg1: i32, %arg2: i32, %arg3: memref<32x32xf32, #tpu.memory_space<vmem>>, %arg4: memref<32x96xbf16, #tpu.memory_space<vmem>>, %arg5: memref<1x32xf32, #tpu.memory_space<vmem>>, %arg6: memref<1x32xf32, #tpu.memory_space<vmem>>, %arg7: memref<32x96xbf16, #tpu.memory_space<vmem>>, %arg8: memref<32x96xf32, #tpu.memory_space<vmem>>, %arg9: memref<32x32xbf16, #tpu.memory_space<vmem>>) attributes {dimension_semantics = [#tpu.dimension_semantics<parallel>, #tpu.dimension_semantics<arbitrary>, #tpu.dimension_semantics<arbitrary>], iteration_bounds = array<i64: 1, 1, 1>, scalar_prefetch = 0 : i64, scratch_operands = 2 : i64, tpu.core_type = #tpu.core_type<tc>, window_params = [{transform_indices = @transform_0, window_bounds = array<i64: 32, 32>}, {transform_indices = @transform_1, window_bounds = array<i64: 32, 96>}, {transform_indices = @transform_2, window_bounds = array<i64: 1, 32>}, {transform_indices = @transform_3, window_bounds = array<i64: 1, 32>}, {transform_indices = @transform_4, window_bounds = array<i64: 32, 96>}]} {
    %c0_i32 = arith.constant 0 : i32
    %0 = arith.cmpi eq, %arg2, %c0_i32 : i32
    %1 = arith.extui %0 : i1 to i32
    %c0_i32_0 = arith.constant 0 : i32
    %2 = arith.cmpi ne, %1, %c0_i32_0 : i32
    scf.if %2 {
      %cst_12 = arith.constant 0.000000e+00 : f32
      %15 = vector.broadcast %cst_12 : f32 to vector<32x96xf32>
      %c0_13 = arith.constant 0 : index
      %c0_14 = arith.constant 0 : index
      %16 = vector.load %arg8[%c0_13, %c0_14] : memref<32x96xf32, #tpu.memory_space<vmem>>, vector<32x96xf32>
      tpu.vector_store %arg8[%c0_13, %c0_14], %15 {strides = array<i32>} : memref<32x96xf32, #tpu.memory_space<vmem>>, vector<32x96xf32>,
    } else {
    }
    %c0_i32_1 = arith.constant 0 : i32
    %3 = arith.cmpi eq, %arg1, %c0_i32_1 : i32
    %4 = arith.extui %3 : i1 to i32
    %c0_i32_2 = arith.constant 0 : i32
    %5 = arith.cmpi ne, %4, %c0_i32_2 : i32
    scf.if %5 {
      %c0_12 = arith.constant 0 : index
      %c0_13 = arith.constant 0 : index
      %15 = vector.load %arg3[%c0_12, %c0_13] : memref<32x32xf32, #tpu.memory_space<vmem>>, vector<32x32xf32>
      %cst_14 = arith.constant dense<0.000000e+00> : vector<32xf32>
      %16 = vector.multi_reduction <add>, %15, %cst_14 [1] : vector<32x32xf32> to vector<32xf32>
      %17 = vector.shape_cast %16 : vector<32xf32> to vector<32x1xf32>
      %cst_15 = arith.constant 3.200000e+01 : f32
      %18 = vector.broadcast %cst_15 : f32 to vector<32x1xf32>
      %19 = arith.divf %17, %18 : vector<32x1xf32>
      %20 = vector.broadcast %19 : vector<32x1xf32> to vector<32x32xf32>
      %21 = arith.subf %15, %20 : vector<32x32xf32>
      %22 = arith.mulf %21, %21 : vector<32x32xf32>
      %cst_16 = arith.constant dense<0.000000e+00> : vector<32xf32>
      %23 = vector.multi_reduction <add>, %22, %cst_16 [1] : vector<32x32xf32> to vector<32xf32>
      %24 = vector.shape_cast %23 : vector<32xf32> to vector<32x1xf32>
      %cst_17 = arith.constant 3.200000e+01 : f32
      %25 = vector.broadcast %cst_17 : f32 to vector<32x1xf32>
      %26 = arith.divf %24, %25 : vector<32x1xf32>
      %27 = vector.broadcast %19 : vector<32x1xf32> to vector<32x32xf32>
      %28 = arith.subf %15, %27 : vector<32x32xf32>
      %cst_18 = arith.constant 9.99999974E-6 : f32
      %29 = vector.broadcast %cst_18 : f32 to vector<32x1xf32>
      %30 = arith.addf %26, %29 : vector<32x1xf32>
      %31 = math.rsqrt %30 : vector<32x1xf32>
      %32 = vector.broadcast %31 : vector<32x1xf32> to vector<32x32xf32>
      %33 = arith.mulf %28, %32 : vector<32x32xf32>
      %c0_19 = arith.constant 0 : index
      %c0_20 = arith.constant 0 : index
      %34 = vector.load %arg5[%c0_19, %c0_20] : memref<1x32xf32, #tpu.memory_space<vmem>>, vector<1x32xf32>
      %35 = vector.broadcast %34 : vector<1x32xf32> to vector<32x32xf32>
      %36 = arith.mulf %33, %35 : vector<32x32xf32>
      %c0_21 = arith.constant 0 : index
      %c0_22 = arith.constant 0 : index
      %37 = vector.load %arg6[%c0_21, %c0_22] : memref<1x32xf32, #tpu.memory_space<vmem>>, vector<1x32xf32>
      %38 = vector.broadcast %37 : vector<1x32xf32> to vector<32x32xf32>
      %39 = arith.addf %36, %38 : vector<32x32xf32>
      %40 = arith.truncf %39 : vector<32x32xf32> to vector<32x32xbf16>
      %c0_23 = arith.constant 0 : index
      %c0_24 = arith.constant 0 : index
      %41 = vector.load %arg9[%c0_23, %c0_24] : memref<32x32xbf16, #tpu.memory_space<vmem>>, vector<32x32xbf16>
      tpu.vector_store %arg9[%c0_23, %c0_24], %40 {strides = array<i32>} : memref<32x32xbf16, #tpu.memory_space<vmem>>, vector<32x32xbf16>,
    } else {
    }
    %c0 = arith.constant 0 : index
    %c0_3 = arith.constant 0 : index
    %6 = vector.load %arg9[%c0, %c0_3] : memref<32x32xbf16, #tpu.memory_space<vmem>>, vector<32x32xbf16>
    %c0_4 = arith.constant 0 : index
    %c0_5 = arith.constant 0 : index
    %7 = vector.load %arg8[%c0_4, %c0_5] : memref<32x96xf32, #tpu.memory_space<vmem>>, vector<32x96xf32>
    %c0_6 = arith.constant 0 : index
    %c0_7 = arith.constant 0 : index
    %8 = vector.load %arg4[%c0_6, %c0_7] : memref<32x96xbf16, #tpu.memory_space<vmem>>, vector<32x96xbf16>
    %cst = arith.constant dense<0.000000e+00> : vector<32x96xf32>
    %9 = tpu.matmul %6, %8, %cst {dimension_numbers = #tpu.dot_dimension_numbers<[1], [0], [0], [1], [0, 0, 1, 1], [], []>} : vector<32x32xbf16>, vector<32x96xbf16>, vector<32x96xf32> -> vector<32x96xf32>
    %10 = arith.addf %7, %9 : vector<32x96xf32>
    %c0_8 = arith.constant 0 : index
    %c0_9 = arith.constant 0 : index
    %11 = vector.load %arg8[%c0_8, %c0_9] : memref<32x96xf32, #tpu.memory_space<vmem>>, vector<32x96xf32>
    tpu.vector_store %arg8[%c0_8, %c0_9], %10 {strides = array<i32>} : memref<32x96xf32, #tpu.memory_space<vmem>>, vector<32x96xf32>,
    %c0_i32_10 = arith.constant 0 : i32
    %12 = arith.cmpi eq, %arg2, %c0_i32_10 : i32
    %13 = arith.extui %12 : i1 to i32
    %c0_i32_11 = arith.constant 0 : i32
    %14 = arith.cmpi ne, %13, %c0_i32_11 : i32
    scf.if %14 {
      %c0_12 = arith.constant 0 : index
      %c0_13 = arith.constant 0 : index
      %15 = vector.load %arg8[%c0_12, %c0_13] : memref<32x96xf32, #tpu.memory_space<vmem>>, vector<32x96xf32>
      %16 = arith.truncf %15 : vector<32x96xf32> to vector<32x96xbf16>
      %c0_14 = arith.constant 0 : index
      %c0_15 = arith.constant 0 : index
      %17 = vector.load %arg7[%c0_14, %c0_15] : memref<32x96xbf16, #tpu.memory_space<vmem>>, vector<32x96xbf16>
      tpu.vector_store %arg7[%c0_14, %c0_15], %16 {strides = array<i32>} : memref<32x96xbf16, #tpu.memory_space<vmem>>, vector<32x96xbf16>,
    } else {
    }
    return
  }
  func.func @transform_0(%arg0: i32, %arg1: i32, %arg2: i32) -> (i32, i32) {
    %c0_i32 = arith.constant 0 : i32
    return %arg0, %arg2 : i32, i32
  }
  func.func @transform_1(%arg0: i32, %arg1: i32, %arg2: i32) -> (i32, i32) {
    %c0_i32 = arith.constant 0 : i32
    return %arg2, %arg1 : i32, i32
  }
  func.func @transform_2(%arg0: i32, %arg1: i32, %arg2: i32) -> (i32, i32) {
    %c0_i32 = arith.constant 0 : i32
    %c0_i32_0 = arith.constant 0 : i32
    return %c0_i32, %arg2 : i32, i32
  }
  func.func @transform_3(%arg0: i32, %arg1: i32, %arg2: i32) -> (i32, i32) {
    %c0_i32 = arith.constant 0 : i32
    %c0_i32_0 = arith.constant 0 : i32
    return %c0_i32, %arg2 : i32, i32
  }
  func.func @transform_4(%arg0: i32, %arg1: i32, %arg2: i32) -> (i32, i32) {
    %c0_i32 = arith.constant 0 : i32
    return %arg0, %arg1 : i32, i32
  }
}

module attributes {stable_mosaic.version = 11 : i64} {
  func.func @_mom_attn_kernel(%arg0: i32, %arg1: i32, %arg2: memref<16x96xbf16, #tpu.memory_space<vmem>>, %arg3: memref<1x16x96xbf16, #tpu.memory_space<vmem>>, %arg4: memref<16x32xbf16, #tpu.memory_space<vmem>>) attributes {dimension_semantics = [#tpu.dimension_semantics<parallel>, #tpu.dimension_semantics<parallel>], iteration_bounds = array<i64: 2, 1>, scalar_prefetch = 0 : i64, scratch_operands = 0 : i64, tpu.core_type = #tpu.core_type<tc>, window_params = [{transform_indices = @transform_0, window_bounds = array<i64: 16, 96>}, {transform_indices = @transform_1, window_bounds = array<i64: 1, 16, 96>}, {transform_indices = @transform_2, window_bounds = array<i64: 16, 32>}]} {
    %0 = tpu.iota {dimensions = array<i32: 1>} : vector<1x16xi32>
    %c15_i32 = arith.constant 15 : i32
    %1 = vector.broadcast %c15_i32 : i32 to vector<1x16xi32>
    %2 = arith.cmpi slt, %0, %1 : vector<1x16xi32>
    %cst = arith.constant 0.000000e+00 : f32
    %cst_0 = arith.constant -1.000000e+30 : f32
    %3 = vector.broadcast %cst : f32 to vector<1x16xf32>
    %4 = vector.broadcast %cst_0 : f32 to vector<1x16xf32>
    %5 = arith.select %2, %3, %4 : vector<1x16xi1>, vector<1x16xf32>
    %c0 = arith.constant 0 : index
    %c0_1 = arith.constant 0 : index
    %6 = vector.load %arg2[%c0, %c0_1] : memref<16x96xbf16, #tpu.memory_space<vmem>>, vector<16x8xbf16>
    %c0_2 = arith.constant 0 : index
    %c0_3 = arith.constant 0 : index
    %c32 = arith.constant 32 : index
    %7 = vector.load %arg3[%c0_2, %c0_3, %c32] : memref<1x16x96xbf16, #tpu.memory_space<vmem>>, vector<1x16x8xbf16>
    %8 = vector.shape_cast %7 : vector<1x16x8xbf16> to vector<16x8xbf16>
    %9 = arith.extf %8 : vector<16x8xbf16> to vector<16x8xf32>
    %c0_4 = arith.constant 0 : index
    %c0_5 = arith.constant 0 : index
    %c64 = arith.constant 64 : index
    %10 = vector.load %arg3[%c0_4, %c0_5, %c64] : memref<1x16x96xbf16, #tpu.memory_space<vmem>>, vector<1x16x8xbf16>
    %11 = vector.shape_cast %10 : vector<1x16x8xbf16> to vector<16x8xbf16>
    %12 = arith.mulf %9, %9 : vector<16x8xf32>
    %cst_6 = arith.constant dense<0.000000e+00> : vector<16xf32>
    %13 = vector.multi_reduction <add>, %12, %cst_6 [1] : vector<16x8xf32> to vector<16xf32>
    %14 = vector.shape_cast %13 : vector<16xf32> to vector<16x1xf32>
    %cst_7 = arith.constant 1.000000e-24 : f32
    %15 = vector.broadcast %cst_7 : f32 to vector<16x1xf32>
    %16 = arith.maximumf %14, %15 : vector<16x1xf32>
    %17 = math.rsqrt %16 : vector<16x1xf32>
    %18 = vector.broadcast %17 : vector<16x1xf32> to vector<16x8xf32>
    %19 = arith.mulf %9, %18 : vector<16x8xf32>
    %20 = arith.extf %6 : vector<16x8xbf16> to vector<16x8xf32>
    %21 = arith.mulf %20, %20 : vector<16x8xf32>
    %cst_8 = arith.constant dense<0.000000e+00> : vector<16xf32>
    %22 = vector.multi_reduction <add>, %21, %cst_8 [1] : vector<16x8xf32> to vector<16xf32>
    %23 = vector.shape_cast %22 : vector<16xf32> to vector<16x1xf32>
    %24 = arith.mulf %19, %19 : vector<16x8xf32>
    %cst_9 = arith.constant dense<0.000000e+00> : vector<16xf32>
    %25 = vector.multi_reduction <add>, %24, %cst_9 [1] : vector<16x8xf32> to vector<16xf32>
    %26 = vector.shape_cast %25 : vector<16xf32> to vector<1x16xf32>
    %27 = arith.truncf %19 : vector<16x8xf32> to vector<16x8xbf16>
    %cst_10 = arith.constant dense<0.000000e+00> : vector<16x16xf32>
    %28 = tpu.matmul %6, %27, %cst_10 {dimension_numbers = #tpu.dot_dimension_numbers<[1], [1], [0], [0], [0, 0, 1, 0], [], []>} : vector<16x8xbf16>, vector<16x8xbf16>, vector<16x16xf32> -> vector<16x16xf32>
    %29 = vector.broadcast %23 : vector<16x1xf32> to vector<16x16xf32>
    %30 = vector.broadcast %26 : vector<1x16xf32> to vector<16x16xf32>
    %31 = arith.addf %29, %30 : vector<16x16xf32>
    %cst_11 = arith.constant 2.000000e+00 : f32
    %32 = vector.broadcast %cst_11 : f32 to vector<16x16xf32>
    %33 = arith.mulf %32, %28 : vector<16x16xf32>
    %34 = arith.subf %31, %33 : vector<16x16xf32>
    %cst_12 = arith.constant -0.353553385 : f32
    %35 = vector.broadcast %cst_12 : f32 to vector<16x16xf32>
    %36 = arith.mulf %35, %34 : vector<16x16xf32>
    %37 = vector.broadcast %5 : vector<1x16xf32> to vector<16x16xf32>
    %38 = arith.addf %36, %37 : vector<16x16xf32>
    %cst_13 = arith.constant dense<0xFF800000> : vector<16xf32>
    %39 = vector.multi_reduction <maximumf>, %38, %cst_13 [1] : vector<16x16xf32> to vector<16xf32>
    %40 = vector.shape_cast %39 : vector<16xf32> to vector<16x1xf32>
    %41 = vector.broadcast %40 : vector<16x1xf32> to vector<16x16xf32>
    %42 = arith.subf %38, %41 : vector<16x16xf32>
    %43 = math.exp %42 : vector<16x16xf32>
    %cst_14 = arith.constant dense<0.000000e+00> : vector<16xf32>
    %44 = vector.multi_reduction <add>, %43, %cst_14 [1] : vector<16x16xf32> to vector<16xf32>
    %45 = vector.shape_cast %44 : vector<16xf32> to vector<16x1xf32>
    %46 = tpu.reciprocal %45 {approx = true} : vector<16x1xf32> -> vector<16x1xf32>
    %47 = vector.broadcast %46 : vector<16x1xf32> to vector<16x16xf32>
    %48 = arith.mulf %43, %47 : vector<16x16xf32>
    %49 = arith.truncf %48 : vector<16x16xf32> to vector<16x16xbf16>
    %cst_15 = arith.constant dense<0.000000e+00> : vector<16x8xf32>
    %50 = tpu.matmul %49, %11, %cst_15 {dimension_numbers = #tpu.dot_dimension_numbers<[1], [0], [0], [1], [0, 0, 1, 1], [], []>} : vector<16x16xbf16>, vector<16x8xbf16>, vector<16x8xf32> -> vector<16x8xf32>
    %51 = arith.truncf %50 : vector<16x8xf32> to vector<16x8xbf16>
    %c0_16 = arith.constant 0 : index
    %c0_17 = arith.constant 0 : index
    %52 = vector.load %arg4[%c0_16, %c0_17] : memref<16x32xbf16, #tpu.memory_space<vmem>>, vector<16x8xbf16>
    tpu.vector_store %arg4[%c0_16, %c0_17], %51 {strides = array<i32>} : memref<16x32xbf16, #tpu.memory_space<vmem>>, vector<16x8xbf16>,
    %c0_18 = arith.constant 0 : index
    %c8 = arith.constant 8 : index
    %53 = vector.load %arg2[%c0_18, %c8] : memref<16x96xbf16, #tpu.memory_space<vmem>>, vector<16x8xbf16>
    %c0_19 = arith.constant 0 : index
    %c0_20 = arith.constant 0 : index
    %c40 = arith.constant 40 : index
    %54 = vector.load %arg3[%c0_19, %c0_20, %c40] : memref<1x16x96xbf16, #tpu.memory_space<vmem>>, vector<1x16x8xbf16>
    %55 = vector.shape_cast %54 : vector<1x16x8xbf16> to vector<16x8xbf16>
    %56 = arith.extf %55 : vector<16x8xbf16> to vector<16x8xf32>
    %c0_21 = arith.constant 0 : index
    %c0_22 = arith.constant 0 : index
    %c72 = arith.constant 72 : index
    %57 = vector.load %arg3[%c0_21, %c0_22, %c72] : memref<1x16x96xbf16, #tpu.memory_space<vmem>>, vector<1x16x8xbf16>
    %58 = vector.shape_cast %57 : vector<1x16x8xbf16> to vector<16x8xbf16>
    %59 = arith.mulf %56, %56 : vector<16x8xf32>
    %cst_23 = arith.constant dense<0.000000e+00> : vector<16xf32>
    %60 = vector.multi_reduction <add>, %59, %cst_23 [1] : vector<16x8xf32> to vector<16xf32>
    %61 = vector.shape_cast %60 : vector<16xf32> to vector<16x1xf32>
    %cst_24 = arith.constant 1.000000e-24 : f32
    %62 = vector.broadcast %cst_24 : f32 to vector<16x1xf32>
    %63 = arith.maximumf %61, %62 : vector<16x1xf32>
    %64 = math.rsqrt %63 : vector<16x1xf32>
    %65 = vector.broadcast %64 : vector<16x1xf32> to vector<16x8xf32>
    %66 = arith.mulf %56, %65 : vector<16x8xf32>
    %67 = arith.extf %53 : vector<16x8xbf16> to vector<16x8xf32>
    %68 = arith.mulf %67, %67 : vector<16x8xf32>
    %cst_25 = arith.constant dense<0.000000e+00> : vector<16xf32>
    %69 = vector.multi_reduction <add>, %68, %cst_25 [1] : vector<16x8xf32> to vector<16xf32>
    %70 = vector.shape_cast %69 : vector<16xf32> to vector<16x1xf32>
    %71 = arith.mulf %66, %66 : vector<16x8xf32>
    %cst_26 = arith.constant dense<0.000000e+00> : vector<16xf32>
    %72 = vector.multi_reduction <add>, %71, %cst_26 [1] : vector<16x8xf32> to vector<16xf32>
    %73 = vector.shape_cast %72 : vector<16xf32> to vector<1x16xf32>
    %74 = arith.truncf %66 : vector<16x8xf32> to vector<16x8xbf16>
    %cst_27 = arith.constant dense<0.000000e+00> : vector<16x16xf32>
    %75 = tpu.matmul %53, %74, %cst_27 {dimension_numbers = #tpu.dot_dimension_numbers<[1], [1], [0], [0], [0, 0, 1, 0], [], []>} : vector<16x8xbf16>, vector<16x8xbf16>, vector<16x16xf32> -> vector<16x16xf32>
    %76 = vector.broadcast %70 : vector<16x1xf32> to vector<16x16xf32>
    %77 = vector.broadcast %73 : vector<1x16xf32> to vector<16x16xf32>
    %78 = arith.addf %76, %77 : vector<16x16xf32>
    %cst_28 = arith.constant 2.000000e+00 : f32
    %79 = vector.broadcast %cst_28 : f32 to vector<16x16xf32>
    %80 = arith.mulf %79, %75 : vector<16x16xf32>
    %81 = arith.subf %78, %80 : vector<16x16xf32>
    %cst_29 = arith.constant -0.353553385 : f32
    %82 = vector.broadcast %cst_29 : f32 to vector<16x16xf32>
    %83 = arith.mulf %82, %81 : vector<16x16xf32>
    %84 = vector.broadcast %5 : vector<1x16xf32> to vector<16x16xf32>
    %85 = arith.addf %83, %84 : vector<16x16xf32>
    %cst_30 = arith.constant dense<0xFF800000> : vector<16xf32>
    %86 = vector.multi_reduction <maximumf>, %85, %cst_30 [1] : vector<16x16xf32> to vector<16xf32>
    %87 = vector.shape_cast %86 : vector<16xf32> to vector<16x1xf32>
    %88 = vector.broadcast %87 : vector<16x1xf32> to vector<16x16xf32>
    %89 = arith.subf %85, %88 : vector<16x16xf32>
    %90 = math.exp %89 : vector<16x16xf32>
    %cst_31 = arith.constant dense<0.000000e+00> : vector<16xf32>
    %91 = vector.multi_reduction <add>, %90, %cst_31 [1] : vector<16x16xf32> to vector<16xf32>
    %92 = vector.shape_cast %91 : vector<16xf32> to vector<16x1xf32>
    %93 = tpu.reciprocal %92 {approx = true} : vector<16x1xf32> -> vector<16x1xf32>
    %94 = vector.broadcast %93 : vector<16x1xf32> to vector<16x16xf32>
    %95 = arith.mulf %90, %94 : vector<16x16xf32>
    %96 = arith.truncf %95 : vector<16x16xf32> to vector<16x16xbf16>
    %cst_32 = arith.constant dense<0.000000e+00> : vector<16x8xf32>
    %97 = tpu.matmul %96, %58, %cst_32 {dimension_numbers = #tpu.dot_dimension_numbers<[1], [0], [0], [1], [0, 0, 1, 1], [], []>} : vector<16x16xbf16>, vector<16x8xbf16>, vector<16x8xf32> -> vector<16x8xf32>
    %98 = arith.truncf %97 : vector<16x8xf32> to vector<16x8xbf16>
    %c0_33 = arith.constant 0 : index
    %c8_34 = arith.constant 8 : index
    %99 = vector.load %arg4[%c0_33, %c8_34] : memref<16x32xbf16, #tpu.memory_space<vmem>>, vector<16x8xbf16>
    tpu.vector_store %arg4[%c0_33, %c8_34], %98 {strides = array<i32>} : memref<16x32xbf16, #tpu.memory_space<vmem>>, vector<16x8xbf16>,
    %c0_35 = arith.constant 0 : index
    %c16 = arith.constant 16 : index
    %100 = vector.load %arg2[%c0_35, %c16] : memref<16x96xbf16, #tpu.memory_space<vmem>>, vector<16x8xbf16>
    %c0_36 = arith.constant 0 : index
    %c0_37 = arith.constant 0 : index
    %c48 = arith.constant 48 : index
    %101 = vector.load %arg3[%c0_36, %c0_37, %c48] : memref<1x16x96xbf16, #tpu.memory_space<vmem>>, vector<1x16x8xbf16>
    %102 = vector.shape_cast %101 : vector<1x16x8xbf16> to vector<16x8xbf16>
    %103 = arith.extf %102 : vector<16x8xbf16> to vector<16x8xf32>
    %c0_38 = arith.constant 0 : index
    %c0_39 = arith.constant 0 : index
    %c80 = arith.constant 80 : index
    %104 = vector.load %arg3[%c0_38, %c0_39, %c80] : memref<1x16x96xbf16, #tpu.memory_space<vmem>>, vector<1x16x8xbf16>
    %105 = vector.shape_cast %104 : vector<1x16x8xbf16> to vector<16x8xbf16>
    %106 = arith.mulf %103, %103 : vector<16x8xf32>
    %cst_40 = arith.constant dense<0.000000e+00> : vector<16xf32>
    %107 = vector.multi_reduction <add>, %106, %cst_40 [1] : vector<16x8xf32> to vector<16xf32>
    %108 = vector.shape_cast %107 : vector<16xf32> to vector<16x1xf32>
    %cst_41 = arith.constant 1.000000e-24 : f32
    %109 = vector.broadcast %cst_41 : f32 to vector<16x1xf32>
    %110 = arith.maximumf %108, %109 : vector<16x1xf32>
    %111 = math.rsqrt %110 : vector<16x1xf32>
    %112 = vector.broadcast %111 : vector<16x1xf32> to vector<16x8xf32>
    %113 = arith.mulf %103, %112 : vector<16x8xf32>
    %114 = arith.extf %100 : vector<16x8xbf16> to vector<16x8xf32>
    %115 = arith.mulf %114, %114 : vector<16x8xf32>
    %cst_42 = arith.constant dense<0.000000e+00> : vector<16xf32>
    %116 = vector.multi_reduction <add>, %115, %cst_42 [1] : vector<16x8xf32> to vector<16xf32>
    %117 = vector.shape_cast %116 : vector<16xf32> to vector<16x1xf32>
    %118 = arith.mulf %113, %113 : vector<16x8xf32>
    %cst_43 = arith.constant dense<0.000000e+00> : vector<16xf32>
    %119 = vector.multi_reduction <add>, %118, %cst_43 [1] : vector<16x8xf32> to vector<16xf32>
    %120 = vector.shape_cast %119 : vector<16xf32> to vector<1x16xf32>
    %121 = arith.truncf %113 : vector<16x8xf32> to vector<16x8xbf16>
    %cst_44 = arith.constant dense<0.000000e+00> : vector<16x16xf32>
    %122 = tpu.matmul %100, %121, %cst_44 {dimension_numbers = #tpu.dot_dimension_numbers<[1], [1], [0], [0], [0, 0, 1, 0], [], []>} : vector<16x8xbf16>, vector<16x8xbf16>, vector<16x16xf32> -> vector<16x16xf32>
    %123 = vector.broadcast %117 : vector<16x1xf32> to vector<16x16xf32>
    %124 = vector.broadcast %120 : vector<1x16xf32> to vector<16x16xf32>
    %125 = arith.addf %123, %124 : vector<16x16xf32>
    %cst_45 = arith.constant 2.000000e+00 : f32
    %126 = vector.broadcast %cst_45 : f32 to vector<16x16xf32>
    %127 = arith.mulf %126, %122 : vector<16x16xf32>
    %128 = arith.subf %125, %127 : vector<16x16xf32>
    %cst_46 = arith.constant -0.353553385 : f32
    %129 = vector.broadcast %cst_46 : f32 to vector<16x16xf32>
    %130 = arith.mulf %129, %128 : vector<16x16xf32>
    %131 = vector.broadcast %5 : vector<1x16xf32> to vector<16x16xf32>
    %132 = arith.addf %130, %131 : vector<16x16xf32>
    %cst_47 = arith.constant dense<0xFF800000> : vector<16xf32>
    %133 = vector.multi_reduction <maximumf>, %132, %cst_47 [1] : vector<16x16xf32> to vector<16xf32>
    %134 = vector.shape_cast %133 : vector<16xf32> to vector<16x1xf32>
    %135 = vector.broadcast %134 : vector<16x1xf32> to vector<16x16xf32>
    %136 = arith.subf %132, %135 : vector<16x16xf32>
    %137 = math.exp %136 : vector<16x16xf32>
    %cst_48 = arith.constant dense<0.000000e+00> : vector<16xf32>
    %138 = vector.multi_reduction <add>, %137, %cst_48 [1] : vector<16x16xf32> to vector<16xf32>
    %139 = vector.shape_cast %138 : vector<16xf32> to vector<16x1xf32>
    %140 = tpu.reciprocal %139 {approx = true} : vector<16x1xf32> -> vector<16x1xf32>
    %141 = vector.broadcast %140 : vector<16x1xf32> to vector<16x16xf32>
    %142 = arith.mulf %137, %141 : vector<16x16xf32>
    %143 = arith.truncf %142 : vector<16x16xf32> to vector<16x16xbf16>
    %cst_49 = arith.constant dense<0.000000e+00> : vector<16x8xf32>
    %144 = tpu.matmul %143, %105, %cst_49 {dimension_numbers = #tpu.dot_dimension_numbers<[1], [0], [0], [1], [0, 0, 1, 1], [], []>} : vector<16x16xbf16>, vector<16x8xbf16>, vector<16x8xf32> -> vector<16x8xf32>
    %145 = arith.truncf %144 : vector<16x8xf32> to vector<16x8xbf16>
    %c0_50 = arith.constant 0 : index
    %c16_51 = arith.constant 16 : index
    %146 = vector.load %arg4[%c0_50, %c16_51] : memref<16x32xbf16, #tpu.memory_space<vmem>>, vector<16x8xbf16>
    tpu.vector_store %arg4[%c0_50, %c16_51], %145 {strides = array<i32>} : memref<16x32xbf16, #tpu.memory_space<vmem>>, vector<16x8xbf16>,
    %c0_52 = arith.constant 0 : index
    %c24 = arith.constant 24 : index
    %147 = vector.load %arg2[%c0_52, %c24] : memref<16x96xbf16, #tpu.memory_space<vmem>>, vector<16x8xbf16>
    %c0_53 = arith.constant 0 : index
    %c0_54 = arith.constant 0 : index
    %c56 = arith.constant 56 : index
    %148 = vector.load %arg3[%c0_53, %c0_54, %c56] : memref<1x16x96xbf16, #tpu.memory_space<vmem>>, vector<1x16x8xbf16>
    %149 = vector.shape_cast %148 : vector<1x16x8xbf16> to vector<16x8xbf16>
    %150 = arith.extf %149 : vector<16x8xbf16> to vector<16x8xf32>
    %c0_55 = arith.constant 0 : index
    %c0_56 = arith.constant 0 : index
    %c88 = arith.constant 88 : index
    %151 = vector.load %arg3[%c0_55, %c0_56, %c88] : memref<1x16x96xbf16, #tpu.memory_space<vmem>>, vector<1x16x8xbf16>
    %152 = vector.shape_cast %151 : vector<1x16x8xbf16> to vector<16x8xbf16>
    %153 = arith.mulf %150, %150 : vector<16x8xf32>
    %cst_57 = arith.constant dense<0.000000e+00> : vector<16xf32>
    %154 = vector.multi_reduction <add>, %153, %cst_57 [1] : vector<16x8xf32> to vector<16xf32>
    %155 = vector.shape_cast %154 : vector<16xf32> to vector<16x1xf32>
    %cst_58 = arith.constant 1.000000e-24 : f32
    %156 = vector.broadcast %cst_58 : f32 to vector<16x1xf32>
    %157 = arith.maximumf %155, %156 : vector<16x1xf32>
    %158 = math.rsqrt %157 : vector<16x1xf32>
    %159 = vector.broadcast %158 : vector<16x1xf32> to vector<16x8xf32>
    %160 = arith.mulf %150, %159 : vector<16x8xf32>
    %161 = arith.extf %147 : vector<16x8xbf16> to vector<16x8xf32>
    %162 = arith.mulf %161, %161 : vector<16x8xf32>
    %cst_59 = arith.constant dense<0.000000e+00> : vector<16xf32>
    %163 = vector.multi_reduction <add>, %162, %cst_59 [1] : vector<16x8xf32> to vector<16xf32>
    %164 = vector.shape_cast %163 : vector<16xf32> to vector<16x1xf32>
    %165 = arith.mulf %160, %160 : vector<16x8xf32>
    %cst_60 = arith.constant dense<0.000000e+00> : vector<16xf32>
    %166 = vector.multi_reduction <add>, %165, %cst_60 [1] : vector<16x8xf32> to vector<16xf32>
    %167 = vector.shape_cast %166 : vector<16xf32> to vector<1x16xf32>
    %168 = arith.truncf %160 : vector<16x8xf32> to vector<16x8xbf16>
    %cst_61 = arith.constant dense<0.000000e+00> : vector<16x16xf32>
    %169 = tpu.matmul %147, %168, %cst_61 {dimension_numbers = #tpu.dot_dimension_numbers<[1], [1], [0], [0], [0, 0, 1, 0], [], []>} : vector<16x8xbf16>, vector<16x8xbf16>, vector<16x16xf32> -> vector<16x16xf32>
    %170 = vector.broadcast %164 : vector<16x1xf32> to vector<16x16xf32>
    %171 = vector.broadcast %167 : vector<1x16xf32> to vector<16x16xf32>
    %172 = arith.addf %170, %171 : vector<16x16xf32>
    %cst_62 = arith.constant 2.000000e+00 : f32
    %173 = vector.broadcast %cst_62 : f32 to vector<16x16xf32>
    %174 = arith.mulf %173, %169 : vector<16x16xf32>
    %175 = arith.subf %172, %174 : vector<16x16xf32>
    %cst_63 = arith.constant -0.353553385 : f32
    %176 = vector.broadcast %cst_63 : f32 to vector<16x16xf32>
    %177 = arith.mulf %176, %175 : vector<16x16xf32>
    %178 = vector.broadcast %5 : vector<1x16xf32> to vector<16x16xf32>
    %179 = arith.addf %177, %178 : vector<16x16xf32>
    %cst_64 = arith.constant dense<0xFF800000> : vector<16xf32>
    %180 = vector.multi_reduction <maximumf>, %179, %cst_64 [1] : vector<16x16xf32> to vector<16xf32>
    %181 = vector.shape_cast %180 : vector<16xf32> to vector<16x1xf32>
    %182 = vector.broadcast %181 : vector<16x1xf32> to vector<16x16xf32>
    %183 = arith.subf %179, %182 : vector<16x16xf32>
    %184 = math.exp %183 : vector<16x16xf32>
    %cst_65 = arith.constant dense<0.000000e+00> : vector<16xf32>
    %185 = vector.multi_reduction <add>, %184, %cst_65 [1] : vector<16x16xf32> to vector<16xf32>
    %186 = vector.shape_cast %185 : vector<16xf32> to vector<16x1xf32>
    %187 = tpu.reciprocal %186 {approx = true} : vector<16x1xf32> -> vector<16x1xf32>
    %188 = vector.broadcast %187 : vector<16x1xf32> to vector<16x16xf32>
    %189 = arith.mulf %184, %188 : vector<16x16xf32>
    %190 = arith.truncf %189 : vector<16x16xf32> to vector<16x16xbf16>
    %cst_66 = arith.constant dense<0.000000e+00> : vector<16x8xf32>
    %191 = tpu.matmul %190, %152, %cst_66 {dimension_numbers = #tpu.dot_dimension_numbers<[1], [0], [0], [1], [0, 0, 1, 1], [], []>} : vector<16x16xbf16>, vector<16x8xbf16>, vector<16x8xf32> -> vector<16x8xf32>
    %192 = arith.truncf %191 : vector<16x8xf32> to vector<16x8xbf16>
    %c0_67 = arith.constant 0 : index
    %c24_68 = arith.constant 24 : index
    %193 = vector.load %arg4[%c0_67, %c24_68] : memref<16x32xbf16, #tpu.memory_space<vmem>>, vector<16x8xbf16>
    tpu.vector_store %arg4[%c0_67, %c24_68], %192 {strides = array<i32>} : memref<16x32xbf16, #tpu.memory_space<vmem>>, vector<16x8xbf16>,
    return
  }
  func.func @transform_0(%arg0: i32, %arg1: i32) -> (i32, i32) {
    %c1_i32 = arith.constant 1 : i32
    %0 = arith.muli %arg0, %c1_i32 : i32
    %1 = arith.addi %0, %arg1 : i32
    %c0_i32 = arith.constant 0 : i32
    %c0_i32_0 = arith.constant 0 : i32
    return %1, %c0_i32 : i32, i32
  }
  func.func @transform_1(%arg0: i32, %arg1: i32) -> (i32, i32, i32) {
    %c0_i32 = arith.constant 0 : i32
    %c0_i32_0 = arith.constant 0 : i32
    %c0_i32_1 = arith.constant 0 : i32
    return %arg0, %c0_i32, %c0_i32_0 : i32, i32, i32
  }
  func.func @transform_2(%arg0: i32, %arg1: i32) -> (i32, i32) {
    %c1_i32 = arith.constant 1 : i32
    %0 = arith.muli %arg0, %c1_i32 : i32
    %1 = arith.addi %0, %arg1 : i32
    %c0_i32 = arith.constant 0 : i32
    %c0_i32_0 = arith.constant 0 : i32
    return %1, %c0_i32 : i32, i32
  }
}

module attributes {stable_mosaic.version = 11 : i64} {
  func.func @_linear_kernel(%arg0: i32, %arg1: i32, %arg2: i32, %arg3: memref<32x32xbf16, #tpu.memory_space<vmem>>, %arg4: memref<32x32xbf16, #tpu.memory_space<vmem>>, %arg5: memref<1x32xf32, #tpu.memory_space<vmem>>, %arg6: memref<32x32xf32, #tpu.memory_space<vmem>>, %arg7: memref<32x32xbf16, #tpu.memory_space<vmem>>, %arg8: memref<32x32xf32, #tpu.memory_space<vmem>>) attributes {dimension_semantics = [#tpu.dimension_semantics<parallel>, #tpu.dimension_semantics<parallel>, #tpu.dimension_semantics<arbitrary>], iteration_bounds = array<i64: 1, 1, 1>, scalar_prefetch = 0 : i64, scratch_operands = 1 : i64, tpu.core_type = #tpu.core_type<tc>, window_params = [{transform_indices = @transform_0, window_bounds = array<i64: 32, 32>}, {transform_indices = @transform_1, window_bounds = array<i64: 32, 32>}, {transform_indices = @transform_2, window_bounds = array<i64: 1, 32>}, {transform_indices = @transform_3, window_bounds = array<i64: 32, 32>}, {transform_indices = @transform_4, window_bounds = array<i64: 32, 32>}]} {
    %c0_i32 = arith.constant 0 : i32
    %0 = arith.cmpi eq, %arg2, %c0_i32 : i32
    %1 = arith.extui %0 : i1 to i32
    %c0_i32_0 = arith.constant 0 : i32
    %2 = arith.cmpi ne, %1, %c0_i32_0 : i32
    scf.if %2 {
      %cst_10 = arith.constant 0.000000e+00 : f32
      %12 = vector.broadcast %cst_10 : f32 to vector<32x32xf32>
      %c0_11 = arith.constant 0 : index
      %c0_12 = arith.constant 0 : index
      %13 = vector.load %arg8[%c0_11, %c0_12] : memref<32x32xf32, #tpu.memory_space<vmem>>, vector<32x32xf32>
      tpu.vector_store %arg8[%c0_11, %c0_12], %12 {strides = array<i32>} : memref<32x32xf32, #tpu.memory_space<vmem>>, vector<32x32xf32>,
    } else {
    }
    %c0 = arith.constant 0 : index
    %c0_1 = arith.constant 0 : index
    %3 = vector.load %arg3[%c0, %c0_1] : memref<32x32xbf16, #tpu.memory_space<vmem>>, vector<32x32xbf16>
    %c0_2 = arith.constant 0 : index
    %c0_3 = arith.constant 0 : index
    %4 = vector.load %arg8[%c0_2, %c0_3] : memref<32x32xf32, #tpu.memory_space<vmem>>, vector<32x32xf32>
    %c0_4 = arith.constant 0 : index
    %c0_5 = arith.constant 0 : index
    %5 = vector.load %arg4[%c0_4, %c0_5] : memref<32x32xbf16, #tpu.memory_space<vmem>>, vector<32x32xbf16>
    %cst = arith.constant dense<0.000000e+00> : vector<32x32xf32>
    %6 = tpu.matmul %3, %5, %cst {dimension_numbers = #tpu.dot_dimension_numbers<[1], [0], [0], [1], [0, 0, 1, 1], [], []>} : vector<32x32xbf16>, vector<32x32xbf16>, vector<32x32xf32> -> vector<32x32xf32>
    %7 = arith.addf %4, %6 : vector<32x32xf32>
    %c0_6 = arith.constant 0 : index
    %c0_7 = arith.constant 0 : index
    %8 = vector.load %arg8[%c0_6, %c0_7] : memref<32x32xf32, #tpu.memory_space<vmem>>, vector<32x32xf32>
    tpu.vector_store %arg8[%c0_6, %c0_7], %7 {strides = array<i32>} : memref<32x32xf32, #tpu.memory_space<vmem>>, vector<32x32xf32>,
    %c0_i32_8 = arith.constant 0 : i32
    %9 = arith.cmpi eq, %arg2, %c0_i32_8 : i32
    %10 = arith.extui %9 : i1 to i32
    %c0_i32_9 = arith.constant 0 : i32
    %11 = arith.cmpi ne, %10, %c0_i32_9 : i32
    scf.if %11 {
      %c0_10 = arith.constant 0 : index
      %c0_11 = arith.constant 0 : index
      %12 = vector.load %arg8[%c0_10, %c0_11] : memref<32x32xf32, #tpu.memory_space<vmem>>, vector<32x32xf32>
      %c0_12 = arith.constant 0 : index
      %c0_13 = arith.constant 0 : index
      %13 = vector.load %arg5[%c0_12, %c0_13] : memref<1x32xf32, #tpu.memory_space<vmem>>, vector<1x32xf32>
      %14 = vector.broadcast %13 : vector<1x32xf32> to vector<32x32xf32>
      %15 = arith.addf %12, %14 : vector<32x32xf32>
      %c0_14 = arith.constant 0 : index
      %c0_15 = arith.constant 0 : index
      %16 = vector.load %arg6[%c0_14, %c0_15] : memref<32x32xf32, #tpu.memory_space<vmem>>, vector<32x32xf32>
      %17 = arith.addf %15, %16 : vector<32x32xf32>
      %18 = arith.truncf %17 : vector<32x32xf32> to vector<32x32xbf16>
      %c0_16 = arith.constant 0 : index
      %c0_17 = arith.constant 0 : index
      %19 = vector.load %arg7[%c0_16, %c0_17] : memref<32x32xbf16, #tpu.memory_space<vmem>>, vector<32x32xbf16>
      tpu.vector_store %arg7[%c0_16, %c0_17], %18 {strides = array<i32>} : memref<32x32xbf16, #tpu.memory_space<vmem>>, vector<32x32xbf16>,
    } else {
    }
    return
  }
  func.func @transform_0(%arg0: i32, %arg1: i32, %arg2: i32) -> (i32, i32) {
    %c0_i32 = arith.constant 0 : i32
    return %arg0, %arg2 : i32, i32
  }
  func.func @transform_1(%arg0: i32, %arg1: i32, %arg2: i32) -> (i32, i32) {
    %c0_i32 = arith.constant 0 : i32
    return %arg2, %arg1 : i32, i32
  }
  func.func @transform_2(%arg0: i32, %arg1: i32, %arg2: i32) -> (i32, i32) {
    %c0_i32 = arith.constant 0 : i32
    %c0_i32_0 = arith.constant 0 : i32
    return %c0_i32, %arg1 : i32, i32
  }
  func.func @transform_3(%arg0: i32, %arg1: i32, %arg2: i32) -> (i32, i32) {
    %c0_i32 = arith.constant 0 : i32
    return %arg0, %arg1 : i32, i32
  }
  func.func @transform_4(%arg0: i32, %arg1: i32, %arg2: i32) -> (i32, i32) {
    %c0_i32 = arith.constant 0 : i32
    return %arg0, %arg1 : i32, i32
  }
}

module attributes {stable_mosaic.version = 11 : i64} {
  func.func @_linear_kernel(%arg0: i32, %arg1: i32, %arg2: i32, %arg3: memref<32x32xbf16, #tpu.memory_space<vmem>>, %arg4: memref<32x128xbf16, #tpu.memory_space<vmem>>, %arg5: memref<1x128xf32, #tpu.memory_space<vmem>>, %arg6: memref<1x32xf32, #tpu.memory_space<vmem>>, %arg7: memref<1x32xf32, #tpu.memory_space<vmem>>, %arg8: memref<32x128xbf16, #tpu.memory_space<vmem>>, %arg9: memref<32x128xf32, #tpu.memory_space<vmem>>, %arg10: memref<32x32xbf16, #tpu.memory_space<vmem>>) attributes {dimension_semantics = [#tpu.dimension_semantics<parallel>, #tpu.dimension_semantics<arbitrary>, #tpu.dimension_semantics<arbitrary>], iteration_bounds = array<i64: 1, 1, 1>, scalar_prefetch = 0 : i64, scratch_operands = 2 : i64, tpu.core_type = #tpu.core_type<tc>, window_params = [{transform_indices = @transform_0, window_bounds = array<i64: 32, 32>}, {transform_indices = @transform_1, window_bounds = array<i64: 32, 128>}, {transform_indices = @transform_2, window_bounds = array<i64: 1, 128>}, {transform_indices = @transform_3, window_bounds = array<i64: 1, 32>}, {transform_indices = @transform_4, window_bounds = array<i64: 1, 32>}, {transform_indices = @transform_5, window_bounds = array<i64: 32, 128>}]} {
    %c0_i32 = arith.constant 0 : i32
    %0 = arith.cmpi eq, %arg2, %c0_i32 : i32
    %1 = arith.extui %0 : i1 to i32
    %c0_i32_0 = arith.constant 0 : i32
    %2 = arith.cmpi ne, %1, %c0_i32_0 : i32
    scf.if %2 {
      %cst_12 = arith.constant 0.000000e+00 : f32
      %15 = vector.broadcast %cst_12 : f32 to vector<32x128xf32>
      %c0_13 = arith.constant 0 : index
      %c0_14 = arith.constant 0 : index
      %16 = vector.load %arg9[%c0_13, %c0_14] : memref<32x128xf32, #tpu.memory_space<vmem>>, vector<32x128xf32>
      tpu.vector_store %arg9[%c0_13, %c0_14], %15 {strides = array<i32>} : memref<32x128xf32, #tpu.memory_space<vmem>>, vector<32x128xf32>,
    } else {
    }
    %c0_i32_1 = arith.constant 0 : i32
    %3 = arith.cmpi eq, %arg1, %c0_i32_1 : i32
    %4 = arith.extui %3 : i1 to i32
    %c0_i32_2 = arith.constant 0 : i32
    %5 = arith.cmpi ne, %4, %c0_i32_2 : i32
    scf.if %5 {
      %c0_12 = arith.constant 0 : index
      %c0_13 = arith.constant 0 : index
      %15 = vector.load %arg3[%c0_12, %c0_13] : memref<32x32xbf16, #tpu.memory_space<vmem>>, vector<32x32xbf16>
      %16 = arith.extf %15 : vector<32x32xbf16> to vector<32x32xf32>
      %cst_14 = arith.constant dense<0.000000e+00> : vector<32xf32>
      %17 = vector.multi_reduction <add>, %16, %cst_14 [1] : vector<32x32xf32> to vector<32xf32>
      %18 = vector.shape_cast %17 : vector<32xf32> to vector<32x1xf32>
      %cst_15 = arith.constant 3.200000e+01 : f32
      %19 = vector.broadcast %cst_15 : f32 to vector<32x1xf32>
      %20 = arith.divf %18, %19 : vector<32x1xf32>
      %21 = vector.broadcast %20 : vector<32x1xf32> to vector<32x32xf32>
      %22 = arith.subf %16, %21 : vector<32x32xf32>
      %23 = arith.mulf %22, %22 : vector<32x32xf32>
      %cst_16 = arith.constant dense<0.000000e+00> : vector<32xf32>
      %24 = vector.multi_reduction <add>, %23, %cst_16 [1] : vector<32x32xf32> to vector<32xf32>
      %25 = vector.shape_cast %24 : vector<32xf32> to vector<32x1xf32>
      %cst_17 = arith.constant 3.200000e+01 : f32
      %26 = vector.broadcast %cst_17 : f32 to vector<32x1xf32>
      %27 = arith.divf %25, %26 : vector<32x1xf32>
      %28 = vector.broadcast %20 : vector<32x1xf32> to vector<32x32xf32>
      %29 = arith.subf %16, %28 : vector<32x32xf32>
      %cst_18 = arith.constant 9.99999974E-6 : f32
      %30 = vector.broadcast %cst_18 : f32 to vector<32x1xf32>
      %31 = arith.addf %27, %30 : vector<32x1xf32>
      %32 = math.rsqrt %31 : vector<32x1xf32>
      %33 = vector.broadcast %32 : vector<32x1xf32> to vector<32x32xf32>
      %34 = arith.mulf %29, %33 : vector<32x32xf32>
      %c0_19 = arith.constant 0 : index
      %c0_20 = arith.constant 0 : index
      %35 = vector.load %arg6[%c0_19, %c0_20] : memref<1x32xf32, #tpu.memory_space<vmem>>, vector<1x32xf32>
      %36 = vector.broadcast %35 : vector<1x32xf32> to vector<32x32xf32>
      %37 = arith.mulf %34, %36 : vector<32x32xf32>
      %c0_21 = arith.constant 0 : index
      %c0_22 = arith.constant 0 : index
      %38 = vector.load %arg7[%c0_21, %c0_22] : memref<1x32xf32, #tpu.memory_space<vmem>>, vector<1x32xf32>
      %39 = vector.broadcast %38 : vector<1x32xf32> to vector<32x32xf32>
      %40 = arith.addf %37, %39 : vector<32x32xf32>
      %41 = arith.truncf %40 : vector<32x32xf32> to vector<32x32xbf16>
      %c0_23 = arith.constant 0 : index
      %c0_24 = arith.constant 0 : index
      %42 = vector.load %arg10[%c0_23, %c0_24] : memref<32x32xbf16, #tpu.memory_space<vmem>>, vector<32x32xbf16>
      tpu.vector_store %arg10[%c0_23, %c0_24], %41 {strides = array<i32>} : memref<32x32xbf16, #tpu.memory_space<vmem>>, vector<32x32xbf16>,
    } else {
    }
    %c0 = arith.constant 0 : index
    %c0_3 = arith.constant 0 : index
    %6 = vector.load %arg10[%c0, %c0_3] : memref<32x32xbf16, #tpu.memory_space<vmem>>, vector<32x32xbf16>
    %c0_4 = arith.constant 0 : index
    %c0_5 = arith.constant 0 : index
    %7 = vector.load %arg9[%c0_4, %c0_5] : memref<32x128xf32, #tpu.memory_space<vmem>>, vector<32x128xf32>
    %c0_6 = arith.constant 0 : index
    %c0_7 = arith.constant 0 : index
    %8 = vector.load %arg4[%c0_6, %c0_7] : memref<32x128xbf16, #tpu.memory_space<vmem>>, vector<32x128xbf16>
    %cst = arith.constant dense<0.000000e+00> : vector<32x128xf32>
    %9 = tpu.matmul %6, %8, %cst {dimension_numbers = #tpu.dot_dimension_numbers<[1], [0], [0], [1], [0, 0, 1, 1], [], []>} : vector<32x32xbf16>, vector<32x128xbf16>, vector<32x128xf32> -> vector<32x128xf32>
    %10 = arith.addf %7, %9 : vector<32x128xf32>
    %c0_8 = arith.constant 0 : index
    %c0_9 = arith.constant 0 : index
    %11 = vector.load %arg9[%c0_8, %c0_9] : memref<32x128xf32, #tpu.memory_space<vmem>>, vector<32x128xf32>
    tpu.vector_store %arg9[%c0_8, %c0_9], %10 {strides = array<i32>} : memref<32x128xf32, #tpu.memory_space<vmem>>, vector<32x128xf32>,
    %c0_i32_10 = arith.constant 0 : i32
    %12 = arith.cmpi eq, %arg2, %c0_i32_10 : i32
    %13 = arith.extui %12 : i1 to i32
    %c0_i32_11 = arith.constant 0 : i32
    %14 = arith.cmpi ne, %13, %c0_i32_11 : i32
    scf.if %14 {
      %c0_12 = arith.constant 0 : index
      %c0_13 = arith.constant 0 : index
      %15 = vector.load %arg9[%c0_12, %c0_13] : memref<32x128xf32, #tpu.memory_space<vmem>>, vector<32x128xf32>
      %c0_14 = arith.constant 0 : index
      %c0_15 = arith.constant 0 : index
      %16 = vector.load %arg5[%c0_14, %c0_15] : memref<1x128xf32, #tpu.memory_space<vmem>>, vector<1x128xf32>
      %17 = vector.broadcast %16 : vector<1x128xf32> to vector<32x128xf32>
      %18 = arith.addf %15, %17 : vector<32x128xf32>
      %cst_16 = arith.constant 5.000000e-01 : f32
      %19 = vector.broadcast %cst_16 : f32 to vector<32x128xf32>
      %20 = arith.mulf %19, %18 : vector<32x128xf32>
      %cst_17 = arith.constant 0.707106769 : f32
      %21 = vector.broadcast %cst_17 : f32 to vector<32x128xf32>
      %22 = arith.mulf %18, %21 : vector<32x128xf32>
      %23 = math.erf %22 : vector<32x128xf32>
      %cst_18 = arith.constant 1.000000e+00 : f32
      %24 = vector.broadcast %cst_18 : f32 to vector<32x128xf32>
      %25 = arith.addf %24, %23 : vector<32x128xf32>
      %26 = arith.mulf %20, %25 : vector<32x128xf32>
      %27 = arith.truncf %26 : vector<32x128xf32> to vector<32x128xbf16>
      %c0_19 = arith.constant 0 : index
      %c0_20 = arith.constant 0 : index
      %28 = vector.load %arg8[%c0_19, %c0_20] : memref<32x128xbf16, #tpu.memory_space<vmem>>, vector<32x128xbf16>
      tpu.vector_store %arg8[%c0_19, %c0_20], %27 {strides = array<i32>} : memref<32x128xbf16, #tpu.memory_space<vmem>>, vector<32x128xbf16>,
    } else {
    }
    return
  }
  func.func @transform_0(%arg0: i32, %arg1: i32, %arg2: i32) -> (i32, i32) {
    %c0_i32 = arith.constant 0 : i32
    return %arg0, %arg2 : i32, i32
  }
  func.func @transform_1(%arg0: i32, %arg1: i32, %arg2: i32) -> (i32, i32) {
    %c0_i32 = arith.constant 0 : i32
    return %arg2, %arg1 : i32, i32
  }
  func.func @transform_2(%arg0: i32, %arg1: i32, %arg2: i32) -> (i32, i32) {
    %c0_i32 = arith.constant 0 : i32
    %c0_i32_0 = arith.constant 0 : i32
    return %c0_i32, %arg1 : i32, i32
  }
  func.func @transform_3(%arg0: i32, %arg1: i32, %arg2: i32) -> (i32, i32) {
    %c0_i32 = arith.constant 0 : i32
    %c0_i32_0 = arith.constant 0 : i32
    return %c0_i32, %arg2 : i32, i32
  }
  func.func @transform_4(%arg0: i32, %arg1: i32, %arg2: i32) -> (i32, i32) {
    %c0_i32 = arith.constant 0 : i32
    %c0_i32_0 = arith.constant 0 : i32
    return %c0_i32, %arg2 : i32, i32
  }
  func.func @transform_5(%arg0: i32, %arg1: i32, %arg2: i32) -> (i32, i32) {
    %c0_i32 = arith.constant 0 : i32
    return %arg0, %arg1 : i32, i32
  }
}

module attributes {stable_mosaic.version = 11 : i64} {
  func.func @_linear_kernel(%arg0: i32, %arg1: i32, %arg2: i32, %arg3: memref<32x128xbf16, #tpu.memory_space<vmem>>, %arg4: memref<128x32xbf16, #tpu.memory_space<vmem>>, %arg5: memref<1x32xf32, #tpu.memory_space<vmem>>, %arg6: memref<32x32xbf16, #tpu.memory_space<vmem>>, %arg7: memref<32x32xf32, #tpu.memory_space<vmem>>, %arg8: memref<32x32xf32, #tpu.memory_space<vmem>>) attributes {dimension_semantics = [#tpu.dimension_semantics<parallel>, #tpu.dimension_semantics<parallel>, #tpu.dimension_semantics<arbitrary>], iteration_bounds = array<i64: 1, 1, 1>, scalar_prefetch = 0 : i64, scratch_operands = 1 : i64, tpu.core_type = #tpu.core_type<tc>, window_params = [{transform_indices = @transform_0, window_bounds = array<i64: 32, 128>}, {transform_indices = @transform_1, window_bounds = array<i64: 128, 32>}, {transform_indices = @transform_2, window_bounds = array<i64: 1, 32>}, {transform_indices = @transform_3, window_bounds = array<i64: 32, 32>}, {transform_indices = @transform_4, window_bounds = array<i64: 32, 32>}]} {
    %c0_i32 = arith.constant 0 : i32
    %0 = arith.cmpi eq, %arg2, %c0_i32 : i32
    %1 = arith.extui %0 : i1 to i32
    %c0_i32_0 = arith.constant 0 : i32
    %2 = arith.cmpi ne, %1, %c0_i32_0 : i32
    scf.if %2 {
      %cst_10 = arith.constant 0.000000e+00 : f32
      %12 = vector.broadcast %cst_10 : f32 to vector<32x32xf32>
      %c0_11 = arith.constant 0 : index
      %c0_12 = arith.constant 0 : index
      %13 = vector.load %arg8[%c0_11, %c0_12] : memref<32x32xf32, #tpu.memory_space<vmem>>, vector<32x32xf32>
      tpu.vector_store %arg8[%c0_11, %c0_12], %12 {strides = array<i32>} : memref<32x32xf32, #tpu.memory_space<vmem>>, vector<32x32xf32>,
    } else {
    }
    %c0 = arith.constant 0 : index
    %c0_1 = arith.constant 0 : index
    %3 = vector.load %arg3[%c0, %c0_1] : memref<32x128xbf16, #tpu.memory_space<vmem>>, vector<32x128xbf16>
    %c0_2 = arith.constant 0 : index
    %c0_3 = arith.constant 0 : index
    %4 = vector.load %arg8[%c0_2, %c0_3] : memref<32x32xf32, #tpu.memory_space<vmem>>, vector<32x32xf32>
    %c0_4 = arith.constant 0 : index
    %c0_5 = arith.constant 0 : index
    %5 = vector.load %arg4[%c0_4, %c0_5] : memref<128x32xbf16, #tpu.memory_space<vmem>>, vector<128x32xbf16>
    %cst = arith.constant dense<0.000000e+00> : vector<32x32xf32>
    %6 = tpu.matmul %3, %5, %cst {dimension_numbers = #tpu.dot_dimension_numbers<[1], [0], [0], [1], [0, 0, 1, 1], [], []>} : vector<32x128xbf16>, vector<128x32xbf16>, vector<32x32xf32> -> vector<32x32xf32>
    %7 = arith.addf %4, %6 : vector<32x32xf32>
    %c0_6 = arith.constant 0 : index
    %c0_7 = arith.constant 0 : index
    %8 = vector.load %arg8[%c0_6, %c0_7] : memref<32x32xf32, #tpu.memory_space<vmem>>, vector<32x32xf32>
    tpu.vector_store %arg8[%c0_6, %c0_7], %7 {strides = array<i32>} : memref<32x32xf32, #tpu.memory_space<vmem>>, vector<32x32xf32>,
    %c0_i32_8 = arith.constant 0 : i32
    %9 = arith.cmpi eq, %arg2, %c0_i32_8 : i32
    %10 = arith.extui %9 : i1 to i32
    %c0_i32_9 = arith.constant 0 : i32
    %11 = arith.cmpi ne, %10, %c0_i32_9 : i32
    scf.if %11 {
      %c0_10 = arith.constant 0 : index
      %c0_11 = arith.constant 0 : index
      %12 = vector.load %arg8[%c0_10, %c0_11] : memref<32x32xf32, #tpu.memory_space<vmem>>, vector<32x32xf32>
      %c0_12 = arith.constant 0 : index
      %c0_13 = arith.constant 0 : index
      %13 = vector.load %arg5[%c0_12, %c0_13] : memref<1x32xf32, #tpu.memory_space<vmem>>, vector<1x32xf32>
      %14 = vector.broadcast %13 : vector<1x32xf32> to vector<32x32xf32>
      %15 = arith.addf %12, %14 : vector<32x32xf32>
      %c0_14 = arith.constant 0 : index
      %c0_15 = arith.constant 0 : index
      %16 = vector.load %arg6[%c0_14, %c0_15] : memref<32x32xbf16, #tpu.memory_space<vmem>>, vector<32x32xbf16>
      %17 = arith.extf %16 : vector<32x32xbf16> to vector<32x32xf32>
      %18 = arith.addf %15, %17 : vector<32x32xf32>
      %c0_16 = arith.constant 0 : index
      %c0_17 = arith.constant 0 : index
      %19 = vector.load %arg7[%c0_16, %c0_17] : memref<32x32xf32, #tpu.memory_space<vmem>>, vector<32x32xf32>
      tpu.vector_store %arg7[%c0_16, %c0_17], %18 {strides = array<i32>} : memref<32x32xf32, #tpu.memory_space<vmem>>, vector<32x32xf32>,
    } else {
    }
    return
  }
  func.func @transform_0(%arg0: i32, %arg1: i32, %arg2: i32) -> (i32, i32) {
    %c0_i32 = arith.constant 0 : i32
    return %arg0, %arg2 : i32, i32
  }
  func.func @transform_1(%arg0: i32, %arg1: i32, %arg2: i32) -> (i32, i32) {
    %c0_i32 = arith.constant 0 : i32
    return %arg2, %arg1 : i32, i32
  }
  func.func @transform_2(%arg0: i32, %arg1: i32, %arg2: i32) -> (i32, i32) {
    %c0_i32 = arith.constant 0 : i32
    %c0_i32_0 = arith.constant 0 : i32
    return %c0_i32, %arg1 : i32, i32
  }
  func.func @transform_3(%arg0: i32, %arg1: i32, %arg2: i32) -> (i32, i32) {
    %c0_i32 = arith.constant 0 : i32
    return %arg0, %arg1 : i32, i32
  }
  func.func @transform_4(%arg0: i32, %arg1: i32, %arg2: i32) -> (i32, i32) {
    %c0_i32 = arith.constant 0 : i32
    return %arg0, %arg1 : i32, i32
  }
}

</mosaic_0001>

<bundles_post_ra>
// kernel: mom_block_fn.5
= control target key start
LH: loop header
LB: loop body
LE: loop exit
PB: predicated region body
PF: predicated region fallthrough
CT: control target
= control target key end

     0   :  { %9 = vsyncpa [#allocation5], 0  ;;  %s352_s15 = smov [#allocation4]   ;;  %s430_s0 = inlined_call_operand.hbm [shape: f32[32,32], index: 0, kind: input, shape index: {}]   ;;  %s431_s1 = inlined_call_operand.vmem [shape: bf16[32,96], index: 1, kind: input, shape index: {}]   ;;  %s432_s2 = inlined_call_operand.vmem [shape: f32[1,32], index: 2, kind: input, shape index: {}]   ;;  %s433_s3 = inlined_call_operand.vmem [shape: f32[1,32], index: 3, kind: input, shape index: {}]   ;;  %s434_s4 = inlined_call_operand.vmem [shape: bf16[32,96], index: 4, kind: output, shape index: {}]  }
   0x1   :  { %s15_s16 = sshll.u32 %s352_s15, 4  ;;  %s16_s16 = int_to_ptr.vmem [resolvable:$true] %s15_s16 }
   0x2   :  { %s338_s17 = scalar_lea.vmem %s16_s16, 512  ;;  %p343_p1 = scmp.lt.s32.totalorder %s16_s16, %s16_s16 }
   0x3   :  { %p339_p0 = scmp.ne.s32.totalorder %s16_s16, %s338_s17  ;;  %p344_p2 = scmp.lt.s32.totalorder %s338_s17, %s338_s17 }
   0x5   :  { %p345_p3 = por %p344_p2, %p343_p1 }
   0x7   :  { %p346_p4 = pnand %p345_p3, %p339_p0 }
   0x9   :  { %349 = shalt.err (!%p346_p4)
}
   0xa   :  { %s353_s18 = smov 128   ;;  %s354_s19 = smov 8  }
   0xb   :  { %21 = dma.hbm_to_vmem [thread:$0]  %s430_s0, 512, %s16_s16, [#allocation5], %s353_s18, %s353_s18, %s354_s19  }
   0xc   :  { %350 = dma.done.wait [#allocation5], 512  }
   0xd   :  { %351 = vsyncadd [#allocation5], 4294966784  ;;  %vm49_vm0 = vcmask 261120   ;;  %v45_v0 = vld [vmem:[#allocation4] sm:$0xff]  ;;  %v47_v1 = vld [vmem:[#allocation4 + $0x10] sm:$0xff]  ;;  %vm36_vm1 = vcmask 785408  }
   0xe   :  { %v46_v2 = vld [vmem:[#allocation4 + $0x8] sm:$0xff]  ;;  %v50_v3 = vsel %vm49_vm0, %v45_v0, 0.0  ;;  %v56_v4 = vsel %vm49_vm0, %v47_v1, 0.0  ;;  %v48_v5 = vld [vmem:[#allocation4 + $0x18] sm:$0xff]  ;;  %v319_v29 = vld [vmem:[%s431_s1] sm:$0xff]   ;;  %v355_v30 = vmov 0.0  }
   0xf   :  { %51 = vadd.xlane.f32.xlu0 %v50_v3  ;;  %57 = vadd.xlane.f32.xlu1 %v56_v4  ;;  %v53_v6 = vsel %vm49_vm0, %v46_v2, 0.0  ;;  %v59_v7 = vsel %vm49_vm0, %v48_v5, 0.0  ;;  %v318_v28 = vld [vmem:[%s431_s1 + $0x8] sm:$0xff]   ;;  %39 = vst.msk [vmem:[#allocation2 + $0x10] sm:$0xff] %vm36_vm1, %v355_v30  ;;  %37 = vst.msk [vmem:[#allocation2] sm:$0xff] %vm36_vm1, %v355_v30  ;;  %vm141_vm2 = vcmask 257024  }
  0x10   :  { %306 = vmatprep.subr.bf16.mxu0 %v318_v28  ;;  %38 = vst.msk [vmem:[#allocation2 + $0x8] sm:$0xff] %vm36_vm1, %v355_v30  ;;  %40 = vst.msk [vmem:[#allocation2 + $0x18] sm:$0xff] %vm36_vm1, %v355_v30  ;;  %v278_v44 = vld [vmem:[%s432_s2] ss:$0 sm:$0xff]  ;;  %vm268_vm3 = vcmask 781312  }
  0x11   :  { %307 = vmatpush3.bf16.msra.mxu0 %v318_v28  ;;  %v279_v46 = vld [vmem:[%s433_s3] ss:$0 sm:$0xff] }
  0x12   :  { %308 = vmatprep.subr.bf16.mxu0 %v319_v29 }
  0x13   :  { %54 = vadd.xlane.f32.xlu0 %v53_v6  ;;  %60 = vadd.xlane.f32.xlu1 %v59_v7 }
  0x15   :  { %309 = vmatpush3.bf16.msra.mxu0 %v319_v29 }
  0x16   :  { %v152_v3 = vld [vmem:[#allocation2 + $0x10] sm:$0xff] }
  0x98   :  { %v52_v8 = vpop.xlane.xlu0 %51  ;;  %v58_v9 = vpop.xlane.xlu1 %57 }
  0x99   :  { %v63_v10 = vmul.f32 0.03125, %v52_v8  ;;  %v65_v11 = vmul.f32 0.03125, %v58_v9  ;;  %v153_v8 = vld [vmem:[#allocation2 + $0x18] sm:$0xff] }
  0x9b   :  { %v67_v12 = vsub.f32 %v45_v0, %v63_v10  ;;  %v69_v13 = vsub.f32 %v47_v1, %v65_v11  ;;  %v151_v11 = vld [vmem:[#allocation2 + $0x8] sm:$0xff] }
  0x9c   :  { %v55_v14 = vpop.xlane.xlu0 %54  ;;  %v61_v15 = vpop.xlane.xlu1 %60 }
  0x9d   :  { %v64_v16 = vmul.f32 0.03125, %v55_v14  ;;  %v66_v17 = vmul.f32 0.03125, %v61_v15  ;;  %v71_v18 = vmul.f32 %v67_v12, %v67_v12  ;;  %v73_v19 = vmul.f32 %v69_v13, %v69_v13 }
  0x9f   :  { %v68_v20 = vsub.f32 %v46_v2, %v64_v16  ;;  %v70_v21 = vsub.f32 %v48_v5, %v66_v17  ;;  %v75_v22 = vsel %vm49_vm0, %v71_v18, 0.0  ;;  %v81_v23 = vsel %vm49_vm0, %v73_v19, 0.0  ;;  %v150_v5 = vld [vmem:[#allocation2] sm:$0xff] }
  0xa0   :  { %76 = vadd.xlane.f32.xlu0 %v75_v22 }
  0xa1   :  { %v72_v24 = vmul.f32 %v68_v20, %v68_v20  ;;  %v74_v25 = vmul.f32 %v70_v21, %v70_v21 }
  0xa3   :  { %v78_v26 = vsel %vm49_vm0, %v72_v24, 0.0  ;;  %v84_v27 = vsel %vm49_vm0, %v74_v25, 0.0 }
  0xa4   :  { %82 = vadd.xlane.f32.xlu0 %v81_v23  ;;  %79 = vadd.xlane.f32.xlu1 %v78_v26 }
  0xa8   :  { %85 = vadd.xlane.f32.xlu1 %v84_v27 }
 0x129   :  { %v77_v31 = vpop.xlane.xlu0 %76 }
 0x12a   :  { %v87_v32 = vmul.f32 0.03125, %v77_v31 }
 0x12c   :  { %v91_v33 = vadd.f32 1e-05, %v87_v32 }
 0x12d   :  { %v80_v34 = vpop.xlane.xlu1 %79  ;;  %v83_v35 = vpop.xlane.xlu0 %82 }
 0x12e   :  { %322 = vrsqrt.f32 %v91_v33  ;;  %v88_v36 = vmul.f32 0.03125, %v80_v34  ;;  %v89_v37 = vmul.f32 0.03125, %v83_v35 }
 0x130   :  { %v92_v38 = vadd.f32 1e-05, %v88_v36  ;;  %v93_v39 = vadd.f32 1e-05, %v89_v37 }
 0x131   :  { %v86_v40 = vpop.xlane.xlu1 %85 }
 0x132   :  { %324 = vrsqrt.f32 %v92_v38  ;;  %v90_v41 = vmul.f32 0.03125, %v86_v40 }
 0x133   :  { %326 = vrsqrt.f32 %v93_v39 }
 0x134   :  { %v94_v42 = vadd.f32 1e-05, %v90_v41 }
 0x136   :  { %328 = vrsqrt.f32 %v94_v42 }
 0x13b   :  { %v323_v43 = vpop.eup %322 }
 0x13c   :  { %v99_v45 = vmul.f32 %v323_v43, %v67_v12 }
 0x13e   :  { %v110_v47 = vmul.f32 %v278_v44, %v99_v45 }
 0x13f   :  { %v325_v48 = vpop.eup %324 }
 0x140   :  { %v327_v49 = vpop.eup %326  ;;  %v121_v50 = vadd.f32 %v279_v46, %v110_v47  ;;  %v100_v51 = vmul.f32 %v325_v48, %v68_v20 }
 0x141   :  { %v101_v52 = vmul.f32 %v327_v49, %v69_v13 }
 0x142   :  { %v294_v53 = vpack.c.bf16 %v121_v50, %v121_v50  ;;  %v111_v54 = vmul.f32 %v278_v44, %v100_v51 }
 0x143   :  { %v329_v55 = vpop.eup %328  ;;  %v112_v56 = vmul.f32 %v278_v44, %v101_v52 }
 0x144   :  { %142 = vst.msk [vmem:[#allocation3] sm:$0xf] %vm141_vm2, %v294_v53  ;;  %v122_v57 = vadd.f32 %v279_v46, %v111_v54  ;;  %v102_v58 = vmul.f32 %v329_v55, %v70_v21 }
 0x145   :  { %v123_v59 = vadd.f32 %v279_v46, %v112_v56 }
 0x146   :  { %v295_v60 = vpack.c.bf16 %v122_v57, %v122_v57  ;;  %v113_v61 = vmul.f32 %v278_v44, %v102_v58 }
 0x147   :  { %v296_v62 = vpack.c.bf16 %v123_v59, %v123_v59 }
 0x148   :  { %143 = vst.msk [vmem:[#allocation3 + $0x4] sm:$0xf] %vm141_vm2, %v295_v60  ;;  %v124_v63 = vadd.f32 %v279_v46, %v113_v61 }
 0x149   :  { %144 = vst.msk [vmem:[#allocation3 + $0x8] sm:$0xf] %vm141_vm2, %v296_v62 }
 0x14a   :  { %v297_v0 = vpack.c.bf16 %v124_v63, %v124_v63 }
 0x14c   :  { %145 = vst.msk [vmem:[#allocation3 + $0xc] sm:$0xf] %vm141_vm2, %v297_v0 }
 0x14f   :  { %v320_v1 = vld [vmem:[#allocation3] sm:$0xff]  }
 0x150   :  { %310 = vmatprep.mubr.msk.bf16.mxu0 %vm49_vm0, %v320_v1 }
 0x153   :  { %v321_v2 = vld [vmem:[#allocation3 + $0x8] sm:$0xff]  }
 0x154   :  { %311 = vmatmul.mubr.msk.bf16.vlgmr.msra.gmra.mxu0 %vm49_vm0, %v321_v2 }
 0x214   :  { %v312_v4 = vpop.f32.mrf.mxu0 }
 0x215   :  { %v238_v6 = vadd.f32 %v312_v4, %v152_v3 }
 0x216   :  { %v221_v7 = vpop.f32.mrf.mxu0 }
 0x217   :  { %243 = vst.msk [vmem:[#allocation2 + $0x10] sm:$0xff] %vm36_vm1, %v238_v6  ;;  %v236_v9 = vadd.f32 %v221_v7, %v150_v5 }
 0x218   :  { %v313_v10 = vpop.f32.mrf.mxu0 }
 0x219   :  { %241 = vst.msk [vmem:[#allocation2] sm:$0xff] %vm36_vm1, %v236_v9  ;;  %v239_v12 = vadd.f32 %v313_v10, %v153_v8 }
 0x21a   :  { %v224_v13 = vpop.f32.mrf.mxu0 }
 0x21b   :  { %244 = vst.msk [vmem:[#allocation2 + $0x18] sm:$0xff] %vm36_vm1, %v239_v12  ;;  %v237_v14 = vadd.f32 %v224_v13, %v151_v11 }
 0x21d   :  { %242 = vst.msk [vmem:[#allocation2 + $0x8] sm:$0xff] %vm36_vm1, %v237_v14 }
 0x21e   :  { %v250_v15 = vld [vmem:[#allocation2 + $0x10] sm:$0xff] }
 0x21f   :  { %v300_v16 = vpack.c.bf16 %v250_v15, %v250_v15 }
 0x220   :  { %v248_v17 = vld [vmem:[#allocation2] sm:$0xff] }
 0x221   :  { %271 = vst.msk [vmem:[%s434_s4 + $0x8] sm:$0xf] %vm268_vm3, %v300_v16  ;;  %v298_v18 = vpack.c.bf16 %v248_v17, %v248_v17 }
 0x222   :  { %v251_v19 = vld [vmem:[#allocation2 + $0x18] sm:$0xff] }
 0x223   :  { %269 = vst.msk [vmem:[%s434_s4] sm:$0xf] %vm268_vm3, %v298_v18  ;;  %v301_v20 = vpack.c.bf16 %v251_v19, %v251_v19 }
 0x224   :  { %v249_v21 = vld [vmem:[#allocation2 + $0x8] sm:$0xff] }
 0x225   :  { %272 = vst.msk [vmem:[%s434_s4 + $0xc] sm:$0xf] %vm268_vm3, %v301_v20  ;;  %v299_v22 = vpack.c.bf16 %v249_v21, %v249_v21 }
 0x227   :  { %270 = vst.msk [vmem:[%s434_s4 + $0x4] sm:$0xf] %vm268_vm3, %v299_v22 }
 0x228   :  { %277 = vsyncpa [#allocation5], 1 }

// kernel: mom_block_fn.7
= control target key start
LH: loop header
LB: loop body
LE: loop exit
PB: predicated region body
PF: predicated region fallthrough
CT: control target
= control target key end

     0   :  { %vm22_vm0 = vcmask 261120   ;;  %v208_v1 = vmov 0.0   ;;  %vm167_vm1 = vcmask 257024   ;;  %s287_s1 = inlined_call_operand.vmem [shape: bf16[32,32], index: 1, kind: input, shape index: {}]   ;;  %s288_s0 = inlined_call_operand.vmem [shape: bf16[32,32], index: 0, kind: input, shape index: {}]   ;;  %s289_s2 = inlined_call_operand.vmem [shape: f32[1,32], index: 2, kind: input, shape index: {}]   ;;  %s290_s3 = inlined_call_operand.vmem [shape: f32[32,32], index: 3, kind: input, shape index: {}]   ;;  %s291_s4 = inlined_call_operand.vmem [shape: bf16[32,32], index: 4, kind: output, shape index: {}]  }
   0x1   :  { %v204_v0 = vld [vmem:[%s287_s1 + $0x8] sm:$0xff]   ;;  %25 = vst.msk [vmem:[#allocation2 + $0x10] sm:$0xff] %vm22_vm0, %v208_v1  ;;  %23 = vst.msk [vmem:[#allocation2] sm:$0xff] %vm22_vm0, %v208_v1  ;;  %v205_v2 = vld [vmem:[%s287_s1] sm:$0xff]  }
   0x2   :  { %24 = vst.msk [vmem:[#allocation2 + $0x8] sm:$0xff] %vm22_vm0, %v208_v1  ;;  %26 = vst.msk [vmem:[#allocation2 + $0x18] sm:$0xff] %vm22_vm0, %v208_v1  ;;  %195 = vmatprep.subr.bf16.mxu0 %v204_v0  ;;  %v206_v3 = vld [vmem:[%s288_s0] sm:$0xff]   ;;  %v207_v4 = vld [vmem:[%s288_s0 + $0x8] sm:$0xff]  }
   0x3   :  { %196 = vmatpush3.bf16.msra.mxu0 %v204_v0  ;;  %199 = vmatprep.mubr.msk.bf16.mxu0 %vm22_vm0, %v206_v3  ;;  %v182_v17 = vld [vmem:[%s289_s2] ss:$0 sm:$0xff]  ;;  %v145_v19 = vld [vmem:[%s290_s3 + $0x10] sm:$0xff]  ;;  %v146_v26 = vld [vmem:[%s290_s3 + $0x18] sm:$0xff] }
   0x4   :  { %197 = vmatprep.subr.bf16.mxu0 %v205_v2  ;;  %v143_v22 = vld [vmem:[%s290_s3] sm:$0xff]  ;;  %v144_v31 = vld [vmem:[%s290_s3 + $0x8] sm:$0xff] }
   0x7   :  { %198 = vmatpush3.bf16.msra.mxu0 %v205_v2 }
   0x8   :  { %v33_v5 = vld [vmem:[#allocation2 + $0x10] sm:$0xff]  ;;  %v31_v7 = vld [vmem:[#allocation2] sm:$0xff] }
   0x9   :  { %v34_v10 = vld [vmem:[#allocation2 + $0x18] sm:$0xff]  ;;  %v32_v13 = vld [vmem:[#allocation2 + $0x8] sm:$0xff] }
   0xa   :  { %200 = vmatmul.mubr.msk.bf16.vlgmr.msra.gmra.mxu0 %vm22_vm0, %v207_v4 }
  0xca   :  { %v201_v6 = vpop.f32.mrf.mxu0 }
  0xcb   :  { %v119_v8 = vadd.f32 %v201_v6, %v33_v5 }
  0xcc   :  { %v102_v9 = vpop.f32.mrf.mxu0 }
  0xcd   :  { %123 = vst.msk [vmem:[#allocation2 + $0x10] sm:$0xff] %vm22_vm0, %v119_v8  ;;  %v117_v11 = vadd.f32 %v102_v9, %v31_v7 }
  0xce   :  { %v202_v12 = vpop.f32.mrf.mxu0 }
  0xcf   :  { %121 = vst.msk [vmem:[#allocation2] sm:$0xff] %vm22_vm0, %v117_v11  ;;  %v120_v14 = vadd.f32 %v202_v12, %v34_v10 }
  0xd0   :  { %v105_v15 = vpop.f32.mrf.mxu0 }
  0xd1   :  { %124 = vst.msk [vmem:[#allocation2 + $0x18] sm:$0xff] %vm22_vm0, %v120_v14  ;;  %v118_v16 = vadd.f32 %v105_v15, %v32_v13 }
  0xd3   :  { %122 = vst.msk [vmem:[#allocation2 + $0x8] sm:$0xff] %vm22_vm0, %v118_v16 }
  0xd4   :  { %v130_v18 = vld [vmem:[#allocation2 + $0x10] sm:$0xff] }
  0xd5   :  { %v141_v20 = vadd.f32 %v182_v17, %v130_v18 }
  0xd6   :  { %v128_v21 = vld [vmem:[#allocation2] sm:$0xff] }
  0xd7   :  { %v149_v23 = vadd.f32 %v145_v19, %v141_v20  ;;  %v139_v24 = vadd.f32 %v182_v17, %v128_v21 }
  0xd8   :  { %v131_v25 = vld [vmem:[#allocation2 + $0x18] sm:$0xff] }
  0xd9   :  { %v189_v27 = vpack.c.bf16 %v149_v23, %v149_v23  ;;  %v147_v28 = vadd.f32 %v143_v22, %v139_v24  ;;  %v142_v29 = vadd.f32 %v182_v17, %v131_v25 }
  0xda   :  { %v129_v30 = vld [vmem:[#allocation2 + $0x8] sm:$0xff] }
  0xdb   :  { %170 = vst.msk [vmem:[%s291_s4 + $0x8] sm:$0xf] %vm167_vm1, %v189_v27  ;;  %v187_v32 = vpack.c.bf16 %v147_v28, %v147_v28  ;;  %v150_v33 = vadd.f32 %v146_v26, %v142_v29  ;;  %v140_v34 = vadd.f32 %v182_v17, %v129_v30 }
  0xdd   :  { %168 = vst.msk [vmem:[%s291_s4] sm:$0xf] %vm167_vm1, %v187_v32  ;;  %v190_v35 = vpack.c.bf16 %v150_v33, %v150_v33  ;;  %v148_v36 = vadd.f32 %v144_v31, %v140_v34 }
  0xdf   :  { %171 = vst.msk [vmem:[%s291_s4 + $0xc] sm:$0xf] %vm167_vm1, %v190_v35  ;;  %v188_v37 = vpack.c.bf16 %v148_v36, %v148_v36 }
  0xe1   :  { %169 = vst.msk [vmem:[%s291_s4 + $0x4] sm:$0xf] %vm167_vm1, %v188_v37 }

// kernel: mom_block_fn.6
= control target key start
LH: loop header
LB: loop body
LE: loop exit
PB: predicated region body
PF: predicated region fallthrough
CT: control target
= control target key end

     0   :  { %s1492_s9 = smov 0   ;;  %s1494_s10 = smov 0   ;;  %s1745_s0 = inlined_call_operand.vmem [shape: bf16[32,96], index: 0, kind: input, shape index: {}]   ;;  %s1746_s1 = inlined_call_operand.vmem [shape: bf16[2,16,96], index: 1, kind: input, shape index: {}]   ;;  %s1747_s2 = inlined_call_operand.vmem [shape: bf16[32,32], index: 2, kind: output, shape index: {}]  }
   0x1   :  { %s1496_s11 = smov 0  }
   0x2 LB: > { %s24_s12 = sadd.s32 1, %s1454_s10  ;;  %p1228_p0 = scmp.ge.s32.totalorder %s1458_s11, 1  ;;  %s1458_s11 = sphi %s1496_s11, %s12_s11   ;;  %s1454_s10 = sphi %s1494_s10, %s1749_s10   ;;  %s1450_s9 = sphi %s1492_s9, %s1748_s9  }
   0x3   : > { %p26_p1 = scmp.ge.s32.totalorder %s24_s12, 2  ;;  %p141_p2 = scmp.lt.s32.totalorder %s1458_s11, 3 }
   0x5   : > { %s1751_s12 = smov (%p26_p1, %s24_s12), 0  ;;  %p142_p3 = pnand %p1228_p0, %p141_p2 }
   0x6   : > { %p178_p4 = scmp.lt.s32.totalorder (!%p142_p3), %s1450_s9, 1  ;;  %s1460_s18 = smov (!%p142_p3), 96  }
   0x7   : > { %145 = sbr.rel (%p142_p3) target bundleno = 1844 (0x734), region = 28  ;;  %s1229_s19 = sshll.u32 (!%p142_p3), %s1450_s9, 1 }
   0x8   : > { %p172_p5 = scmp.lt.s32.totalorder (!%p142_p3), %s1229_s19, 3  ;;  %s1463_s24 = smov (!%p142_p3), 88  }
   0x9   : > { %s1464_s25 = smov (!%p142_p3), 80   ;;  %s1465_s26 = smov (!%p142_p3), 72  }
   0xa   : > { %s1467_s27 = smov (!%p142_p3), 64   ;;  %s1468_s28 = smov (!%p142_p3), 120  }
   0xb   : > { %s1469_s29 = smov (!%p142_p3), 112   ;;  %s1470_s30 = smov (!%p142_p3), 104  }
   0xc   : > { %s179_s13 = scalar_select %p178_p4, %s1450_s9, 1  ;;  %vm212_vm0 = vcmask 64512   ;;  %v1461_v13 = vmov 0.0   ;;  %vm1462_vm1 = vmmov 0   ;;  %v192_v49 = vlaneseq }
   0xd   : > { %1286 = vmatprep.subr.bf16.mxu0 %v1461_v13  ;;  %1292 = vmatprep.subr.bf16.mxu1 %v1461_v13  ;;  %s1753_s19 = smov (!%p172_p5, %s1229_s19), 3  ;;  %vm318_vm2 = vcmask 130112   ;;  %vm343_vm4 = vcmask 130048   ;;  %vm427_vm5 = vcmask 60416   ;;  %s1471_s6 = smov 48   ;;  %vm665_vm6 = vcmask 126016  }
   0xe   : > { %s1261_s14 = sshll.u32 %s179_s13, 3  ;;  %1288 = vmatprep.mubr.msk.bf16.mxu0 %vm1462_vm1, %v1461_v13  ;;  %1294 = vmatprep.mubr.msk.bf16.mxu1 %vm1462_vm1, %v1461_v13  ;;  %s1230_s20 = sshll.u32 %s1753_s19, 2  ;;  %v193_v50 = vand.u32 127, %v192_v49  ;;  %v310_v52 = vshrl.u32 %v192_v49, 7  ;;  %vm903_vm7 = vcmask 191616   ;;  %vm1141_vm8 = vcmask 257216  }
   0xf   : > { %s1517_s17 = scalar_lea.vmem %s1746_s1, %s1261_s14  ;;  %s1546_s23 = scalar_lea.vmem %s1745_s0, %s1230_s20 }
  0x10   : > { %v1520_v0 = vld [vmem:[%s1517_s17] sm:$0xff]   ;;  %v313_v51 = vadd.s32 4294967288, %v193_v50  ;;  %v1605_v55 = vsub.s32 %v193_v50, %v310_v52  ;;  %vm194_vm3 = vcmp.lt.s32.totalorder %v193_v50, 15  ;;  %s1687_s5 = scalar_lea.vmem %s1747_s2, %s1230_s20  ;;  %s1472_s7 = smov 56  }
  0x11   : > { %v200_v1 = vunpack.c.l.bf16 %v1520_v0  ;;  %v201_v2 = vunpack.c.h.bf16 %v1520_v0  ;;  %v196_v21 = vld [vmem:[%s1546_s23] sm:$0xff]   ;;  %s1473_s8 = smov 40   ;;  %s1474_s9 = smov 8  }
  0x12   : > { %v225_v22 = vunpack.c.l.bf16 %v196_v21  ;;  %v226_v24 = vunpack.c.h.bf16 %v196_v21  ;;  %v1559_v34 = vld [vmem:[%s1517_s17] sm:$0xff]   ;;  %v1603_v53 = vsub.s32 %v313_v51, %v310_v52  ;;  %s1475_s13 = smov 16   ;;  %s1476_s14 = smov 24  }
  0x13   : > { %v202_v3 = vmul.f32 %v200_v1, %v200_v1  ;;  %v203_v4 = vmul.f32 %v201_v2, %v201_v2  ;;  %v1562_v35 = vunpack.c.h.bf16 %v1559_v34  ;;  %v1565_v36 = vld [vmem:[%s1517_s17] sm:$0xff]   ;;  %v1573_v39 = vunpack.c.l.bf16 %v1559_v34 }
  0x14   : > { %v227_v23 = vmul.f32 %v225_v22, %v225_v22  ;;  %v228_v28 = vmul.f32 %v226_v24, %v226_v24  ;;  %v1570_v38 = vunpack.c.h.bf16 %v1565_v36  ;;  %v1576_v40 = vld [vmem:[%s1517_s17] sm:$0xff]   ;;  %v1587_v44 = vunpack.c.l.bf16 %v1565_v36 }
  0x15   : > { %206 = vrot.lane.b32.xlu0 %v202_v3, %s1460_s18  ;;  %v437_v37 = vmul.f32 %v1562_v35, %v1562_v35  ;;  %v1582_v42 = vunpack.c.h.bf16 %v1576_v40  ;;  %v436_v43 = vmul.f32 %v1573_v39, %v1573_v39  ;;  %v1596_v47 = vunpack.c.l.bf16 %v1576_v40 }
  0x16   : > { %v229_v27 = vsel %vm212_vm0, %v227_v23, 0.0  ;;  %v232_v31 = vsel %vm212_vm0, %v228_v28, 0.0  ;;  %v675_v41 = vmul.f32 %v1570_v38, %v1570_v38  ;;  %v674_v46 = vmul.f32 %v1587_v44, %v1587_v44 }
  0x17   : > { %v913_v45 = vmul.f32 %v1582_v42, %v1582_v42  ;;  %v912_v48 = vmul.f32 %v1596_v47, %v1596_v47 }
  0x19   : > { %208 = vrot.lane.b32.xlu0 %v203_v4, %s1460_s18 }
  0x87   : > { %v207_v5 = vpop.permute.xlu0 %206 }
  0x88   : > { %v213_v6 = vsel %vm212_vm0, %v207_v5, 0.0  ;;  %v1466_v5 = vmov -1e+30  }
  0x89   : > { %214 = vadd.xlane.f32.xlu1 %v213_v6  ;;  %v1610_v6 = vsel %vm194_vm3, 0.0, %v1466_v5 }
  0x8b   : > { %v209_v7 = vpop.permute.xlu0 %208 }
  0x8c   : > { %v216_v8 = vsel %vm212_vm0, %v209_v7, 0.0 }
  0x8d   : > { %217 = vadd.xlane.f32.xlu1 %v216_v8 }
 0x112   : > { %v215_v9 = vpop.xlane.xlu1 %214 }
 0x113   : > { %v219_v10 = vmax.f32 %v215_v9, 1e-24 }
 0x115   : > { %1388 = vrsqrt.f32 %v219_v10 }
 0x116   : > { %v218_v11 = vpop.xlane.xlu1 %217 }
 0x117   : > { %v220_v12 = vmax.f32 %v218_v11, 1e-24 }
 0x119   : > { %1390 = vrsqrt.f32 %v220_v12 }
 0x122   : > { %v1389_v14 = vpop.eup %1388 }
 0x123   : > { %v223_v15 = vmul.f32 %v1389_v14, %v200_v1 }
 0x125   : > { %v235_v16 = vmul.f32 %v223_v15, %v223_v15 }
 0x126   : > { %v1391_v17 = vpop.eup %1390 }
 0x127   : > { %239 = vrot.lane.b32.xlu1 %v235_v16, %s1460_s18  ;;  %v224_v18 = vmul.f32 %v1391_v17, %v201_v2 }
 0x129   : > { %v251_v19 = vpack.c.bf16 %v224_v18, %v223_v15  ;;  %v236_v20 = vmul.f32 %v224_v18, %v224_v18 }
 0x12b   : > { %258 = vrot.lane.b32.xlu0 %v251_v19, %s1460_s18 }
 0x12f   : > { %241 = vrot.lane.b32.xlu0 %v236_v20, %s1460_s18 }
 0x199   : > { %v240_v25 = vpop.permute.xlu1 %239 }
 0x19a   : > { %v245_v26 = vsel %vm212_vm0, %v240_v25, 0.0 }
 0x19b   : > { %246 = vadd.xlane.f32.xlu0 %v245_v26 }
 0x19d   : > { %v259_v29 = vpop.permute.xlu0 %258 }
 0x19e   : > { %v264_v30 = vsel %vm212_vm0, %v259_v29, 0 }
 0x19f   : > { %1287 = vmatpush3.bf16.xpose.msra.mxu0 %v264_v30  ;;  %230 = vadd.xlane.f32.xlu0 %v229_v27 }
 0x1a0   : > { %1304 = vmatprep.subr.bf16.mxu0 %v1461_v13 }
 0x1a1   : > { %v242_v32 = vpop.permute.xlu0 %241 }
 0x1a2   : > { %v248_v33 = vsel %vm212_vm0, %v242_v32, 0.0 }
 0x1a3   : > { %249 = vadd.xlane.f32.xlu1 %v248_v33  ;;  %233 = vadd.xlane.f32.xlu0 %v232_v31 }
 0x1a6   : > { %1289 = vmatmul.mubr.msk.bf16.vlgmr.msra.gmra.mxu0 %vm212_vm0, %v196_v21 }
 0x1a7   : > { %1306 = vmatprep.mubr.msk.bf16.mxu0 %vm1462_vm1, %v1461_v13 }
 0x1b4   : > { %442 = vrot.lane.b32.xlu1 %v437_v37, %s1463_s24 }
 0x1b8   : > { %680 = vrot.lane.b32.xlu1 %v675_v41, %s1464_s25 }
 0x1b9   : > { %440 = vrot.lane.b32.xlu0 %v436_v43, %s1463_s24 }
 0x1bc   : > { %918 = vrot.lane.b32.xlu1 %v913_v45, %s1465_s26 }
 0x1bd   : > { %678 = vrot.lane.b32.xlu0 %v674_v46, %s1464_s25 }
 0x1c1   : > { %916 = vrot.lane.b32.xlu0 %v912_v48, %s1465_s26 }
 0x224   : > { %v247_v56 = vpop.xlane.xlu0 %246 }
 0x225   : > { %v312_v58 = vrot.slane %v247_v56, %v1605_v55 }
 0x228   : > { %v231_v59 = vpop.xlane.xlu0 %230 }
 0x22c   : > { %v250_v54 = vpop.xlane.xlu1 %249  ;;  %v234_v1 = vpop.xlane.xlu0 %233 }
 0x22d   : > { %v317_v57 = vrot.slane %v250_v54, %v1603_v53 }
 0x22f   : > { %v319_v60 = vsel %vm318_vm2, %v317_v57, %v312_v58 }
 0x230   : > { %v333_v62 = vadd.f32 %v319_v60, %v231_v59  ;;  %v334_v7 = vadd.f32 %v319_v60, %v234_v1  ;;  %v441_v11 = vpop.permute.xlu0 %440  ;;  %v443_v15 = vpop.permute.xlu1 %442 }
 0x231   : > { %v446_v20 = vsel %vm212_vm0, %v441_v11, 0.0  ;;  %v449_v23 = vsel %vm212_vm0, %v443_v15, 0.0 }
 0x234   : > { %v679_v18 = vpop.permute.xlu0 %678  ;;  %v681_v22 = vpop.permute.xlu1 %680 }
 0x235   : > { %v684_v24 = vsel %vm212_vm0, %v679_v18, 0.0  ;;  %v687_v26 = vsel %vm212_vm0, %v681_v22, 0.0 }
 0x238   : > { %v917_v25 = vpop.permute.xlu0 %916  ;;  %v919_v28 = vpop.permute.xlu1 %918 }
 0x239   : > { %v922_v27 = vsel %vm212_vm0, %v917_v25, 0.0  ;;  %v925_v29 = vsel %vm212_vm0, %v919_v28, 0.0 }
 0x266   : > { %v300_v61 = vpop.f32.mrf.mxu0 }
 0x267   : > { %v335_v63 = vmul.f32 2.0, %v300_v61 }
 0x268   : > { %v1290_v2 = vpop.f32.mrf.mxu0 }
 0x269   : > { %v337_v3 = vsub.f32 %v333_v62, %v335_v63  ;;  %v430_v2 = vld [vmem:[%s1546_s23] sm:$0xff]  }
 0x26a   : > { %v303_v4 = vpop.f32.mrf.mxu0  ;;  %v458_v18 = vunpack.c.l.bf16 %v430_v2 }
 0x26b   : > { %v339_v8 = vmul.f32 -0.35355338, %v337_v3  ;;  %v336_v9 = vmul.f32 2.0, %v303_v4 }
 0x26c   : > { %v1291_v10 = vpop.f32.mrf.mxu0 }
 0x26d   : > { %v338_v12 = vsub.f32 %v334_v7, %v336_v9  ;;  %v341_v14 = vadd.f32 %v339_v8, %v1610_v6 }
 0x26f   : > { %v340_v16 = vmul.f32 -0.35355338, %v338_v12  ;;  %v344_v17 = vsel %vm343_vm4, %v341_v14, -inf }
 0x270   : > { %345 = vmax.xlane.f32.xlu0 %v344_v17 }
 0x271   : > { %v342_v19 = vadd.f32 %v340_v16, %v1610_v6 }
 0x273   : > { %v347_v21 = vsel %vm343_vm4, %v342_v19, -inf }
 0x274   : > { %348 = vmax.xlane.f32.xlu1 %v347_v21  ;;  %447 = vadd.xlane.f32.xlu0 %v446_v20  ;;  %v459_v20 = vunpack.c.h.bf16 %v430_v2 }
 0x276   : > { %v461_v22 = vmul.f32 %v459_v20, %v459_v20 }
 0x278   : > { %450 = vadd.xlane.f32.xlu0 %v449_v23  ;;  %685 = vadd.xlane.f32.xlu1 %v684_v24 }
 0x27c   : > { %688 = vadd.xlane.f32.xlu0 %v687_v26  ;;  %923 = vadd.xlane.f32.xlu1 %v922_v27 }
 0x280   : > { %926 = vadd.xlane.f32.xlu0 %v925_v29 }
 0x28d   : > { %372 = vrot.lane.b32.xlu1 %v1520_v0, %s1467_s27 }
 0x2f9   : > { %v346_v30 = vpop.xlane.xlu0 %345 }
 0x2fa   : > { %v350_v31 = vsub.f32 %v341_v14, %v346_v30 }
 0x2fc   : > { %v352_v32 = vmul.f32 1.442695, %v350_v31 }
 0x2fd   : > { %v349_v33 = vpop.xlane.xlu1 %348  ;;  %v448_v37 = vpop.xlane.xlu0 %447 }
 0x2fe   : > { %1392 = vpow2.f32 %v352_v32  ;;  %v351_v41 = vsub.f32 %v342_v19, %v349_v33  ;;  %v452_v52 = vmax.f32 %v448_v37, 1e-24  ;;  %v906_v19 = vld [vmem:[%s1546_s23] sm:$0xff]  }
 0x2ff   : > { %v934_v24 = vunpack.c.l.bf16 %v906_v19  ;;  %v935_v30 = vunpack.c.h.bf16 %v906_v19 }
 0x300   : > { %v354_v43 = vmul.f32 1.442695, %v351_v41 }
 0x301   : > { %v451_v45 = vpop.xlane.xlu0 %450  ;;  %v686_v46 = vpop.xlane.xlu1 %685  ;;  %v936_v27 = vmul.f32 %v934_v24, %v934_v24  ;;  %v937_v31 = vmul.f32 %v935_v30, %v935_v30 }
 0x302   : > { %1394 = vpow2.f32 %v354_v43  ;;  %v690_v48 = vmax.f32 %v686_v46, 1e-24  ;;  %v453_v59 = vmax.f32 %v451_v45, 1e-24 }
 0x304   : > { %1396 = vrsqrt.f32 %v690_v48 }
 0x305   : > { %v689_v49 = vpop.xlane.xlu0 %688  ;;  %v924_v50 = vpop.xlane.xlu1 %923 }
 0x306   : > { %v691_v51 = vmax.f32 %v689_v49, 1e-24  ;;  %v928_v54 = vmax.f32 %v924_v50, 1e-24 }
 0x308   : > { %1398 = vrsqrt.f32 %v691_v51 }
 0x309   : > { %v927_v56 = vpop.xlane.xlu0 %926  ;;  %v373_v0 = vpop.permute.xlu1 %372  ;;  %1400 = vrsqrt.f32 %v452_v52 }
 0x30a   : > { %v929_v57 = vmax.f32 %v927_v56, 1e-24  ;;  %1293 = vmatpush3.bf16.msra.mxu1 %v373_v0  ;;  %1402 = vrsqrt.f32 %v928_v54 }
 0x30b   : > { %v1623_v58 = vpop.eup %1392  ;;  %1298 = vmatprep.subr.bf16.mxu1 %v1461_v13 }
 0x30c   : > { %v356_v60 = vsel %vm343_vm4, %v1623_v58, 0.0  ;;  %1404 = vrsqrt.f32 %v929_v57 }
 0x30d   : > { %357 = vadd.xlane.f32.xlu1 %v356_v60  ;;  %1406 = vrsqrt.f32 %v453_v59 }
 0x30f   : > { %v1628_v61 = vpop.eup %1394 }
 0x310   : > { %v359_v62 = vsel %vm343_vm4, %v1628_v61, 0.0 }
 0x311   : > { %360 = vadd.xlane.f32.xlu0 %v359_v62  ;;  %v1397_v63 = vpop.eup %1396 }
 0x312   : > { %v694_v5 = vmul.f32 %v1397_v63, %v1587_v44 }
 0x315   : > { %v1399_v1 = vpop.eup %1398 }
 0x316   : > { %v1401_v3 = vpop.eup %1400  ;;  %v695_v7 = vmul.f32 %v1399_v1, %v1570_v38  ;;  %v668_v38 = vld [vmem:[%s1546_s23] sm:$0xff]  }
 0x317   : > { %v1403_v4 = vpop.eup %1402  ;;  %v456_v14 = vmul.f32 %v1401_v3, %v1573_v39  ;;  %v696_v39 = vunpack.c.l.bf16 %v668_v38  ;;  %v697_v26 = vunpack.c.h.bf16 %v668_v38 }
 0x318   : > { %v730_v10 = vpack.c.bf16 %v695_v7, %v694_v5  ;;  %v932_v11 = vmul.f32 %v1403_v4, %v1596_v47  ;;  %v460_v47 = vmul.f32 %v458_v18, %v458_v18  ;;  %v715_v25 = vmul.f32 %v695_v7, %v695_v7 }
 0x319   : > { %v1405_v8 = vpop.eup %1404  ;;  %v476_v17 = vmul.f32 %v456_v14, %v456_v14  ;;  %v698_v21 = vmul.f32 %v696_v39, %v696_v39  ;;  %v699_v28 = vmul.f32 %v697_v26, %v697_v26 }
 0x31a   : > { %v1407_v9 = vpop.eup %1406  ;;  %v933_v12 = vmul.f32 %v1405_v8, %v1582_v42  ;;  %v952_v23 = vmul.f32 %v932_v11, %v932_v11 }
 0x31b   : > { %v457_v15 = vmul.f32 %v1407_v9, %v1562_v35  ;;  %v714_v35 = vmul.f32 %v694_v5, %v694_v5 }
 0x31c   : > { %v968_v44 = vpack.c.bf16 %v933_v12, %v932_v11  ;;  %v953_v29 = vmul.f32 %v933_v12, %v933_v12 }
 0x31d   : > { %v492_v16 = vpack.c.bf16 %v457_v15, %v456_v14  ;;  %v477_v42 = vmul.f32 %v457_v15, %v457_v15 }
 0x31e   : > { %498 = vrot.lane.b32.xlu1 %v430_v2, %s1468_s28 }
 0x322   : > { %739 = vrot.lane.b32.xlu1 %v730_v10, %s1464_s25 }
 0x326   : > { %977 = vrot.lane.b32.xlu1 %v968_v44, %s1465_s26 }
 0x327   : > { %501 = vrot.lane.b32.xlu0 %v492_v16, %s1463_s24 }
 0x32a   : > { %480 = vrot.lane.b32.xlu1 %v476_v17, %s1463_s24 }
 0x32b   : > { %736 = vrot.lane.b32.xlu0 %v668_v38, %s1469_s29 }
 0x32e   : > { %464 = vrot.lane.b32.xlu1 %v460_v47, %s1468_s28 }
 0x32f   : > { %974 = vrot.lane.b32.xlu0 %v906_v19, %s1470_s30 }
 0x332   : > { %718 = vrot.lane.b32.xlu1 %v714_v35, %s1464_s25 }
 0x333   : > { %482 = vrot.lane.b32.xlu0 %v477_v42, %s1463_s24 }
 0x336   : > { %702 = vrot.lane.b32.xlu1 %v698_v21, %s1469_s29 }
 0x337   : > { %466 = vrot.lane.b32.xlu0 %v461_v22, %s1468_s28 }
 0x33a   : > { %956 = vrot.lane.b32.xlu1 %v952_v23, %s1465_s26 }
 0x33b   : > { %720 = vrot.lane.b32.xlu0 %v715_v25, %s1464_s25 }
 0x33e   : > { %940 = vrot.lane.b32.xlu1 %v936_v27, %s1470_s30 }
 0x33f   : > { %704 = vrot.lane.b32.xlu0 %v699_v28, %s1469_s29 }
 0x343   : > { %958 = vrot.lane.b32.xlu0 %v953_v29, %s1465_s26 }
 0x347   : > { %942 = vrot.lane.b32.xlu0 %v937_v31, %s1470_s30 }
 0x396   : > { %v358_v32 = vpop.xlane.xlu1 %357 }
 0x397   : > { %1408 = vrcp.f32 %v358_v32 }
 0x39a   : > { %v361_v33 = vpop.xlane.xlu0 %360  ;;  %v499_v37 = vpop.permute.xlu1 %498 }
 0x39b   : > { %1410 = vrcp.f32 %v361_v33 }
 0x39e   : > { %v502_v41 = vpop.permute.xlu0 %501  ;;  %v740_v43 = vpop.permute.xlu1 %739 }
 0x39f   : > { %v507_v62 = vsel %vm212_vm0, %v502_v41, 0  ;;  %v745_v5 = vsel %vm212_vm0, %v740_v43, 0 }
 0x3a2   : > { %v737_v45 = vpop.permute.xlu0 %736  ;;  %v978_v46 = vpop.permute.xlu1 %977 }
 0x3a3   : > { %v983_v44 = vsel %vm212_vm0, %v978_v46, 0 }
 0x3a4   : > { %v1409_v48 = vpop.eup %1408 }
 0x3a5   : > { %v364_v54 = vmul.f32 %v1409_v48, %v1623_v58 }
 0x3a6   : > { %v975_v49 = vpop.permute.xlu0 %974  ;;  %v481_v50 = vpop.permute.xlu1 %480 }
 0x3a7   : > { %v486_v51 = vsel %vm212_vm0, %v481_v50, 0.0 }
 0x3a8   : > { %v1411_v52 = vpop.eup %1410  ;;  %487 = vadd.xlane.f32.xlu1 %v486_v51 }
 0x3a9   : > { %v365_v56 = vmul.f32 %v1411_v52, %v1628_v61 }
 0x3aa   : > { %v483_v0 = vpop.permute.xlu0 %482  ;;  %v465_v57 = vpop.permute.xlu1 %464 }
 0x3ab   : > { %v489_v59 = vsel %vm212_vm0, %v483_v0, 0.0  ;;  %v366_v60 = vpack.c.bf16 %v365_v56, %v364_v54  ;;  %v470_v63 = vsel %vm212_vm0, %v465_v57, 0.0 }
 0x3ac   : > { %490 = vadd.xlane.f32.xlu0 %v489_v59 }
 0x3ad   : > { %1295 = vmatmul.mubr.msk.bf16.vlgmr.msra.gmra.mxu1 %vm343_vm4, %v366_v60 }
 0x3ae   : > { %1299 = vmatpush3.bf16.xpose.msra.mxu1 %v507_v62  ;;  %v467_v1 = vpop.permute.xlu0 %466  ;;  %v719_v2 = vpop.permute.xlu1 %718  ;;  %1300 = vmatprep.mubr.msk.bf16.mxu1 %vm1462_vm1, %v1461_v13 }
 0x3af   : > { %v473_v58 = vsel %vm212_vm0, %v467_v1, 0.0  ;;  %1310 = vmatprep.subr.bf16.mxu1 %v1461_v13  ;;  %v724_v61 = vsel %vm212_vm0, %v719_v2, 0.0 }
 0x3b0   : > { %471 = vadd.xlane.f32.xlu0 %v470_v63  ;;  %474 = vadd.xlane.f32.xlu1 %v473_v58 }
 0x3b2   : > { %v721_v3 = vpop.permute.xlu0 %720  ;;  %v703_v4 = vpop.permute.xlu1 %702 }
 0x3b3   : > { %v727_v7 = vsel %vm212_vm0, %v721_v3, 0.0  ;;  %v708_v8 = vsel %vm212_vm0, %v703_v4, 0.0 }
 0x3b4   : > { %725 = vadd.xlane.f32.xlu0 %v724_v61  ;;  %728 = vadd.xlane.f32.xlu1 %v727_v7 }
 0x3b5   : > { %1301 = vmatmul.mubr.msk.bf16.vlgmr.msra.gmra.mxu1 %vm212_vm0, %v499_v37 }
 0x3b6   : > { %1311 = vmatpush3.bf16.xpose.msra.mxu1 %v745_v5  ;;  %v705_v9 = vpop.permute.xlu0 %704  ;;  %1312 = vmatprep.mubr.msk.bf16.mxu1 %vm1462_vm1, %v1461_v13  ;;  %v957_v10 = vpop.permute.xlu1 %956 }
 0x3b7   : > { %v711_v11 = vsel %vm212_vm0, %v705_v9, 0.0  ;;  %1322 = vmatprep.subr.bf16.mxu1 %v1461_v13  ;;  %v962_v12 = vsel %vm212_vm0, %v957_v10, 0.0 }
 0x3b8   : > { %709 = vadd.xlane.f32.xlu0 %v708_v8  ;;  %712 = vadd.xlane.f32.xlu1 %v711_v11 }
 0x3ba   : > { %v959_v14 = vpop.permute.xlu0 %958  ;;  %v941_v15 = vpop.permute.xlu1 %940 }
 0x3bb   : > { %v965_v16 = vsel %vm212_vm0, %v959_v14, 0.0  ;;  %v946_v38 = vsel %vm212_vm0, %v941_v15, 0.0 }
 0x3bc   : > { %963 = vadd.xlane.f32.xlu0 %v962_v12  ;;  %966 = vadd.xlane.f32.xlu1 %v965_v16 }
 0x3bd   : > { %1313 = vmatmul.mubr.msk.bf16.vlgmr.msra.gmra.mxu1 %vm212_vm0, %v737_v45 }
 0x3be   : > { %1323 = vmatpush3.bf16.xpose.msra.mxu1 %v983_v44  ;;  %1324 = vmatprep.mubr.msk.bf16.mxu1 %vm1462_vm1, %v1461_v13  ;;  %v943_v17 = vpop.permute.xlu0 %942 }
 0x3bf   : > { %v949_v18 = vsel %vm212_vm0, %v943_v17, 0.0 }
 0x3c0   : > { %947 = vadd.xlane.f32.xlu0 %v946_v38  ;;  %950 = vadd.xlane.f32.xlu1 %v949_v18 }
 0x3c5   : > { %1325 = vmatmul.mubr.msk.bf16.vlgmr.msra.gmra.mxu1 %vm212_vm0, %v975_v49 }
 0x431   : > { %v488_v47 = vpop.xlane.xlu1 %487 }
 0x432   : > { %v555_v23 = vrot.slane %v488_v47, %v1605_v55 }
 0x435   : > { %v491_v19 = vpop.xlane.xlu0 %490 }
 0x436   : > { %v559_v21 = vrot.slane %v491_v19, %v1603_v53 }
 0x438   : > { %v560_v28 = vsel %vm318_vm2, %v559_v21, %v555_v23 }
 0x439   : > { %v475_v35 = vpop.xlane.xlu1 %474  ;;  %v472_v39 = vpop.xlane.xlu0 %471 }
 0x43a   : > { %v568_v31 = vadd.f32 %v560_v28, %v472_v39  ;;  %v569_v49 = vadd.f32 %v560_v28, %v475_v35 }
 0x43d   : > { %v729_v25 = vpop.xlane.xlu1 %728  ;;  %v726_v26 = vpop.xlane.xlu0 %725 }
 0x43e   : > { %v797_v33 = vrot.slane %v729_v25, %v1603_v53  ;;  %v793_v37 = vrot.slane %v726_v26, %v1605_v55 }
 0x440   : > { %v798_v52 = vsel %vm318_vm2, %v797_v33, %v793_v37 }
 0x441   : > { %v713_v43 = vpop.xlane.xlu1 %712  ;;  %v710_v45 = vpop.xlane.xlu0 %709 }
 0x442   : > { %v806_v62 = vadd.f32 %v798_v52, %v710_v45  ;;  %v807_v8 = vadd.f32 %v798_v52, %v713_v43 }
 0x445   : > { %v967_v56 = vpop.xlane.xlu1 %966  ;;  %v964_v0 = vpop.xlane.xlu0 %963 }
 0x446   : > { %v1035_v58 = vrot.slane %v967_v56, %v1603_v53  ;;  %v1031_v61 = vrot.slane %v964_v0, %v1605_v55 }
 0x448   : > { %v1036_v12 = vsel %vm318_vm2, %v1035_v58, %v1031_v61 }
 0x449   : > { %v948_v14 = vpop.xlane.xlu0 %947  ;;  %v951_v19 = vpop.xlane.xlu1 %950 }
 0x44a   : > { %v1044_v16 = vadd.f32 %v1036_v12, %v948_v14 }
 0x46d   : > { %v412_v42 = vpop.f32.mrf.mxu1 }
 0x46e   : > { %v1262_v20 = vpack.c.bf16 %v412_v42, %v412_v42 }
 0x46f   : > { %v1296_v22 = vpop.f32.mrf.mxu1 }
 0x470   : > { %428 = vst.msk [vmem:[%s1687_s5] sm:$0xf] %vm427_vm5, %v1262_v20  ;;  %v1045_v20 = vadd.f32 %v1036_v12, %v951_v19 }
 0x471   : > { %v415_v24 = vpop.f32.mrf.mxu1 }
 0x472   : > { %v1263_v27 = vpack.c.bf16 %v415_v24, %v415_v24 }
 0x473   : > { %v1297_v29 = vpop.f32.mrf.mxu1 }
 0x474   : > { %429 = vst.msk [vmem:[%s1687_s5 + $0x4] sm:$0xf] %vm427_vm5, %v1263_v27 }
 0x475   : > { %v543_v30 = vpop.f32.mrf.mxu1 }
 0x476   : > { %v570_v32 = vmul.f32 2.0, %v543_v30 }
 0x477   : > { %v1302_v41 = vpop.f32.mrf.mxu1 }
 0x478   : > { %v572_v46 = vsub.f32 %v568_v31, %v570_v32 }
 0x479   : > { %v546_v48 = vpop.f32.mrf.mxu1 }
 0x47a   : > { %v574_v50 = vmul.f32 -0.35355338, %v572_v46  ;;  %v571_v51 = vmul.f32 2.0, %v546_v48 }
 0x47b   : > { %v1303_v54 = vpop.f32.mrf.mxu1 }
 0x47c   : > { %v573_v57 = vsub.f32 %v569_v49, %v571_v51  ;;  %v576_v59 = vadd.f32 %v574_v50, %v1610_v6 }
 0x47d   : > { %v781_v60 = vpop.f32.mrf.mxu1 }
 0x47e   : > { %v575_v63 = vmul.f32 -0.35355338, %v573_v57  ;;  %v808_v1 = vmul.f32 2.0, %v781_v60  ;;  %v578_v2 = vsel %vm343_vm4, %v576_v59, -inf }
 0x47f   : > { %v1314_v3 = vpop.f32.mrf.mxu1  ;;  %579 = vmax.xlane.f32.xlu0 %v578_v2 }
 0x480   : > { %v810_v4 = vsub.f32 %v806_v62, %v808_v1  ;;  %v577_v5 = vadd.f32 %v575_v63, %v1610_v6 }
 0x481   : > { %v784_v7 = vpop.f32.mrf.mxu1 }
 0x482   : > { %v812_v9 = vmul.f32 -0.35355338, %v810_v4  ;;  %v809_v10 = vmul.f32 2.0, %v784_v7  ;;  %v581_v11 = vsel %vm343_vm4, %v577_v5, -inf }
 0x483   : > { %v1315_v15 = vpop.f32.mrf.mxu1  ;;  %582 = vmax.xlane.f32.xlu1 %v581_v11 }
 0x484   : > { %v811_v44 = vsub.f32 %v807_v8, %v809_v10  ;;  %v814_v53 = vadd.f32 %v812_v9, %v1610_v6 }
 0x485   : > { %v1019_v55 = vpop.f32.mrf.mxu1 }
 0x486   : > { %v813_v38 = vmul.f32 -0.35355338, %v811_v44  ;;  %v1046_v17 = vmul.f32 2.0, %v1019_v55  ;;  %v816_v18 = vsel %vm343_vm4, %v814_v53, -inf }
 0x487   : > { %v1326_v47 = vpop.f32.mrf.mxu1  ;;  %817 = vmax.xlane.f32.xlu0 %v816_v18 }
 0x488   : > { %v1048_v35 = vsub.f32 %v1044_v16, %v1046_v17  ;;  %v815_v39 = vadd.f32 %v813_v38, %v1610_v6 }
 0x489   : > { %v1022_v42 = vpop.f32.mrf.mxu1 }
 0x48a   : > { %v1050_v21 = vmul.f32 -0.35355338, %v1048_v35  ;;  %v1047_v22 = vmul.f32 2.0, %v1022_v42  ;;  %v819_v23 = vsel %vm343_vm4, %v815_v39, -inf }
 0x48b   : > { %820 = vmax.xlane.f32.xlu1 %v819_v23  ;;  %v1327_v24 = vpop.f32.mrf.mxu1 }
 0x48c   : > { %v1049_v25 = vsub.f32 %v1045_v20, %v1047_v22  ;;  %v1052_v26 = vadd.f32 %v1050_v21, %v1610_v6 }
 0x48e   : > { %v1051_v27 = vmul.f32 -0.35355338, %v1049_v25  ;;  %v1054_v28 = vsel %vm343_vm4, %v1052_v26, -inf }
 0x48f   : > { %1055 = vmax.xlane.f32.xlu0 %v1054_v28 }
 0x490   : > { %v1053_v29 = vadd.f32 %v1051_v27, %v1610_v6 }
 0x492   : > { %v1057_v30 = vsel %vm343_vm4, %v1053_v29, -inf }
 0x493   : > { %1058 = vmax.xlane.f32.xlu1 %v1057_v30 }
 0x508   : > { %v580_v31 = vpop.xlane.xlu0 %579 }
 0x509   : > { %v584_v32 = vsub.f32 %v576_v59, %v580_v31 }
 0x50b   : > { %v586_v33 = vmul.f32 1.442695, %v584_v32 }
 0x50c   : > { %v583_v37 = vpop.xlane.xlu1 %582 }
 0x50d   : > { %1412 = vpow2.f32 %v586_v33  ;;  %v585_v41 = vsub.f32 %v577_v5, %v583_v37 }
 0x50f   : > { %v588_v43 = vmul.f32 1.442695, %v585_v41 }
 0x510   : > { %v818_v45 = vpop.xlane.xlu0 %817 }
 0x511   : > { %1414 = vpow2.f32 %v588_v43  ;;  %v822_v46 = vsub.f32 %v814_v53, %v818_v45 }
 0x513   : > { %v824_v48 = vmul.f32 1.442695, %v822_v46 }
 0x514   : > { %v821_v49 = vpop.xlane.xlu1 %820 }
 0x515   : > { %1416 = vpow2.f32 %v824_v48  ;;  %v823_v50 = vsub.f32 %v815_v39, %v821_v49 }
 0x517   : > { %v826_v51 = vmul.f32 1.442695, %v823_v50 }
 0x518   : > { %v1056_v52 = vpop.xlane.xlu0 %1055 }
 0x519   : > { %1418 = vpow2.f32 %v826_v51  ;;  %v1060_v6 = vsub.f32 %v1052_v26, %v1056_v52 }
 0x51a   : > { %v1413_v54 = vpop.eup %1412 }
 0x51b   : > { %v1062_v56 = vmul.f32 1.442695, %v1060_v6  ;;  %v590_v0 = vsel %vm343_vm4, %v1413_v54, 0.0 }
 0x51c   : > { %591 = vadd.xlane.f32.xlu0 %v590_v0  ;;  %v1059_v61 = vpop.xlane.xlu1 %1058 }
 0x51d   : > { %1420 = vpow2.f32 %v1062_v56  ;;  %v1061_v3 = vsub.f32 %v1053_v29, %v1059_v61 }
 0x51e   : > { %v1415_v57 = vpop.eup %1414 }
 0x51f   : > { %v593_v59 = vsel %vm343_vm4, %v1415_v57, 0.0  ;;  %v1064_v4 = vmul.f32 1.442695, %v1061_v3 }
 0x520   : > { %594 = vadd.xlane.f32.xlu1 %v593_v59 }
 0x521   : > { %1422 = vpow2.f32 %v1064_v4 }
 0x522   : > { %v1417_v60 = vpop.eup %1416 }
 0x523   : > { %v828_v62 = vsel %vm343_vm4, %v1417_v60, 0.0 }
 0x524   : > { %829 = vadd.xlane.f32.xlu0 %v828_v62 }
 0x526   : > { %v1419_v63 = vpop.eup %1418 }
 0x527   : > { %v831_v1 = vsel %vm343_vm4, %v1419_v63, 0.0 }
 0x528   : > { %832 = vadd.xlane.f32.xlu1 %v831_v1 }
 0x52a   : > { %v1421_v2 = vpop.eup %1420 }
 0x52b   : > { %v1066_v58 = vsel %vm343_vm4, %v1421_v2, 0.0 }
 0x52c   : > { %1067 = vadd.xlane.f32.xlu0 %v1066_v58 }
 0x52e   : > { %v1423_v5 = vpop.eup %1422 }
 0x52f   : > { %v1069_v7 = vsel %vm343_vm4, %v1423_v5, 0.0 }
 0x539   : > { %844 = vrot.lane.b32.xlu1 %v1565_v36, %s1471_s6 }
 0x542   : > { %606 = vrot.lane.b32.xlu0 %v1559_v34, %s1472_s7 }
 0x55d   : > { %1070 = vadd.xlane.f32.xlu1 %v1069_v7 }
 0x56e   : > { %1082 = vrot.lane.b32.xlu1 %v1576_v40, %s1473_s8 }
 0x5a5   : > { %v592_v8 = vpop.xlane.xlu0 %591 }
 0x5a6   : > { %1424 = vrcp.f32 %v592_v8 }
 0x5a9   : > { %v595_v9 = vpop.xlane.xlu1 %594 }
 0x5aa   : > { %1426 = vrcp.f32 %v595_v9 }
 0x5ad   : > { %v830_v10 = vpop.xlane.xlu0 %829 }
 0x5ae   : > { %1428 = vrcp.f32 %v830_v10 }
 0x5b1   : > { %v833_v36 = vpop.xlane.xlu1 %832 }
 0x5b2   : > { %1430 = vrcp.f32 %v833_v36 }
 0x5b3   : > { %v1425_v11 = vpop.eup %1424 }
 0x5b4   : > { %v598_v14 = vmul.f32 %v1425_v11, %v1413_v54 }
 0x5b5   : > { %v1068_v34 = vpop.xlane.xlu0 %1067  ;;  %v845_v40 = vpop.permute.xlu1 %844 }
 0x5b6   : > { %1432 = vrcp.f32 %v1068_v34 }
 0x5b7   : > { %v1427_v12 = vpop.eup %1426 }
 0x5b8   : > { %v599_v15 = vmul.f32 %v1427_v12, %v1415_v57 }
 0x5b9   : > { %v607_v44 = vpop.permute.xlu0 %606 }
 0x5ba   : > { %1305 = vmatpush3.bf16.msra.mxu0 %v607_v44  ;;  %v600_v53 = vpack.c.bf16 %v599_v15, %v598_v14 }
 0x5bb   : > { %1316 = vmatprep.subr.bf16.mxu0 %v1461_v13  ;;  %v1429_v55 = vpop.eup %1428 }
 0x5bc   : > { %v836_v38 = vmul.f32 %v1429_v55, %v1417_v60 }
 0x5bd   : > { %1307 = vmatmul.mubr.msk.bf16.vlgmr.msra.gmra.mxu0 %vm343_vm4, %v600_v53 }
 0x5be   : > { %1317 = vmatpush3.bf16.msra.mxu0 %v845_v40  ;;  %1318 = vmatprep.mubr.msk.bf16.mxu0 %vm1462_vm1, %v1461_v13 }
 0x5bf   : > { %v1431_v16 = vpop.eup %1430  ;;  %1328 = vmatprep.subr.bf16.mxu0 %v1461_v13 }
 0x5c0   : > { %v837_v17 = vmul.f32 %v1431_v16, %v1419_v63 }
 0x5c2   : > { %v838_v18 = vpack.c.bf16 %v837_v17, %v836_v38 }
 0x5c3   : > { %v1433_v35 = vpop.eup %1432 }
 0x5c4   : > { %v1074_v42 = vmul.f32 %v1433_v35, %v1421_v2 }
 0x5c5   : > { %1319 = vmatmul.mubr.msk.bf16.vlgmr.msra.gmra.mxu0 %vm343_vm4, %v838_v18 }
 0x5c6   : > { %1330 = vmatprep.mubr.msk.bf16.mxu0 %vm1462_vm1, %v1461_v13 }
 0x5e6   : > { %v1071_v19 = vpop.xlane.xlu1 %1070 }
 0x5e7   : > { %1434 = vrcp.f32 %v1071_v19 }
 0x5ea   : > { %v1083_v47 = vpop.permute.xlu1 %1082 }
 0x5eb   : > { %1329 = vmatpush3.bf16.msra.mxu0 %v1083_v47 }
 0x5f4   : > { %v1435_v39 = vpop.eup %1434 }
 0x5f5   : > { %v1075_v20 = vmul.f32 %v1435_v39, %v1423_v5 }
 0x5f7   : > { %v1076_v21 = vpack.c.bf16 %v1075_v20, %v1074_v42 }
 0x5f9   : > { %1331 = vmatmul.mubr.msk.bf16.vlgmr.msra.gmra.mxu0 %vm343_vm4, %v1076_v21 }
 0x67d   : > { %v646_v22 = vpop.f32.mrf.mxu0 }
 0x67e   : > { %v1264_v23 = vpack.c.bf16 %v646_v22, %v646_v22 }
 0x67f   : > { %v1308_v24 = vpop.f32.mrf.mxu0 }
 0x680   : > { %659 = vrot.lane.b32.xlu0 %v1264_v23, %s1474_s9 }
 0x681   : > { %v649_v25 = vpop.f32.mrf.mxu0 }
 0x682   : > { %v1265_v26 = vpack.c.bf16 %v649_v25, %v649_v25 }
 0x683   : > { %v1309_v13 = vpop.f32.mrf.mxu0 }
 0x684   : > { %661 = vrot.lane.b32.xlu1 %v1265_v26, %s1474_s9 }
 0x685   : > { %v884_v27 = vpop.f32.mrf.mxu0 }
 0x686   : > { %v1266_v28 = vpack.c.bf16 %v884_v27, %v884_v27 }
 0x687   : > { %v1320_v29 = vpop.f32.mrf.mxu0 }
 0x688   : > { %897 = vrot.lane.b32.xlu0 %v1266_v28, %s1475_s13 }
 0x689   : > { %v887_v30 = vpop.f32.mrf.mxu0 }
 0x68a   : > { %v1267_v31 = vpack.c.bf16 %v887_v30, %v887_v30 }
 0x68b   : > { %v1321_v32 = vpop.f32.mrf.mxu0 }
 0x68c   : > { %899 = vrot.lane.b32.xlu1 %v1267_v31, %s1475_s13 }
 0x6b9   : > { %v1122_v33 = vpop.f32.mrf.mxu0 }
 0x6ba   : > { %v1268_v37 = vpack.c.bf16 %v1122_v33, %v1122_v33 }
 0x6bb   : > { %v1332_v41 = vpop.f32.mrf.mxu0 }
 0x6bc   : > { %1135 = vrot.lane.b32.xlu0 %v1268_v37, %s1476_s14 }
 0x6bd   : > { %v1125_v43 = vpop.f32.mrf.mxu0 }
 0x6be   : > { %v1269_v45 = vpack.c.bf16 %v1125_v43, %v1125_v43 }
 0x6bf   : > { %v1333_v46 = vpop.f32.mrf.mxu0 }
 0x6c0   : > { %1137 = vrot.lane.b32.xlu1 %v1269_v45, %s1476_s14 }
 0x6f2   : > { %v660_v48 = vpop.permute.xlu0 %659 }
 0x6f3   : > { %666 = vst.msk [vmem:[%s1687_s5] sm:$0xf] %vm665_vm6, %v660_v48 }
 0x6f6   : > { %v662_v49 = vpop.permute.xlu1 %661 }
 0x6f7   : > { %667 = vst.msk [vmem:[%s1687_s5 + $0x4] sm:$0xf] %vm665_vm6, %v662_v49 }
 0x6fa   : > { %v898_v50 = vpop.permute.xlu0 %897 }
 0x6fb   : > { %904 = vst.msk [vmem:[%s1687_s5] sm:$0xf] %vm903_vm7, %v898_v50 }
 0x6fe   : > { %v900_v51 = vpop.permute.xlu1 %899 }
 0x6ff   : > { %905 = vst.msk [vmem:[%s1687_s5 + $0x4] sm:$0xf] %vm903_vm7, %v900_v51 }
 0x72e   : > { %v1136_v52 = vpop.permute.xlu0 %1135 }
 0x72f   : > { %1142 = vst.msk [vmem:[%s1687_s5] sm:$0xf] %vm1141_vm8, %v1136_v52 }
 0x732   : > { %v1138_v6 = vpop.permute.xlu1 %1137 }
 0x733   : > { %1143 = vst.msk [vmem:[%s1687_s5 + $0x4] sm:$0xf] %vm1141_vm8, %v1138_v6 }
 0x734 PF: > { %s12_s11 = sadd.s32 1, %s1458_s11   ;;  %s1748_s9 = smov %s1454_s10 }
 0x735   : > { %p9_p6 = scmp.ge.s32.totalorder %s12_s11, 4   ;;  %s1749_s10 = smov %s1751_s12 }
 0x737   :  { %11 = sbr.rel (!%p9_p6) target bundleno = 2 (0x2), region = 61 }

// kernel: mom_block_fn.8
= control target key start
LH: loop header
LB: loop body
LE: loop exit
PB: predicated region body
PF: predicated region fallthrough
CT: control target
= control target key end

     0   :  { %vm41_vm0 = vcmask 261120   ;;  %vm133_vm1 = vcmask 257024   ;;  %s446_s0 = inlined_call_operand.vmem [shape: bf16[32,32], index: 0, kind: input, shape index: {}]   ;;  %s447_s1 = inlined_call_operand.vmem [shape: bf16[32,128], index: 1, kind: input, shape index: {}]   ;;  %s448_s3 = inlined_call_operand.vmem [shape: f32[1,32], index: 3, kind: input, shape index: {}]   ;;  %s449_s4 = inlined_call_operand.vmem [shape: f32[1,32], index: 4, kind: input, shape index: {}]   ;;  %s450_s2 = inlined_call_operand.vmem [shape: f32[1,128], index: 2, kind: input, shape index: {}]   ;;  %s451_s5 = inlined_call_operand.vmem [shape: bf16[32,128], index: 5, kind: output, shape index: {}]  }
   0x1   :  { %v324_v0 = vld [vmem:[%s446_s0] sm:$0xff]   ;;  %v341_v1 = vld [vmem:[%s446_s0 + $0x8] sm:$0xff]  }
   0x2   :  { %v325_v2 = vunpack.c.l.bf16 %v324_v0  ;;  %v329_v3 = vunpack.c.l.bf16 %v341_v1  ;;  %v326_v4 = vunpack.c.h.bf16 %v324_v0  ;;  %v330_v5 = vunpack.c.h.bf16 %v341_v1  ;;  %v355_v30 = vld [vmem:[%s447_s1 + $0x8] sm:$0xff]   ;;  %v356_v31 = vld [vmem:[%s447_s1] sm:$0xff]  }
   0x3   :  { %347 = vmatprep.subr.bf16.mxu0 %v355_v30  ;;  %v298_v45 = vld [vmem:[%s448_s3] ss:$0 sm:$0xff] }
   0x4   :  { %v42_v6 = vsel %vm41_vm0, %v325_v2, 0.0  ;;  %v48_v7 = vsel %vm41_vm0, %v329_v3, 0.0  ;;  %v45_v8 = vsel %vm41_vm0, %v326_v4, 0.0  ;;  %v51_v9 = vsel %vm41_vm0, %v330_v5, 0.0  ;;  %348 = vmatpush3.bf16.msra.mxu0 %v355_v30  ;;  %v299_v47 = vld [vmem:[%s449_s4] ss:$0 sm:$0xff] }
   0x5   :  { %43 = vadd.xlane.f32.xlu0 %v42_v6  ;;  %49 = vadd.xlane.f32.xlu1 %v48_v7 }
   0x6   :  { %349 = vmatprep.subr.bf16.mxu0 %v356_v31 }
   0x8   :  { %350 = vmatpush3.bf16.msra.mxu0 %v356_v31 }
   0x9   :  { %46 = vadd.xlane.f32.xlu0 %v45_v8  ;;  %52 = vadd.xlane.f32.xlu1 %v51_v9 }
  0x8e   :  { %v44_v10 = vpop.xlane.xlu0 %43  ;;  %v50_v11 = vpop.xlane.xlu1 %49 }
  0x8f   :  { %v55_v12 = vmul.f32 0.03125, %v44_v10  ;;  %v57_v13 = vmul.f32 0.03125, %v50_v11 }
  0x91   :  { %v59_v14 = vsub.f32 %v325_v2, %v55_v12  ;;  %v61_v15 = vsub.f32 %v329_v3, %v57_v13 }
  0x92   :  { %v47_v16 = vpop.xlane.xlu0 %46  ;;  %v53_v17 = vpop.xlane.xlu1 %52 }
  0x93   :  { %v56_v18 = vmul.f32 0.03125, %v47_v16  ;;  %v58_v19 = vmul.f32 0.03125, %v53_v17  ;;  %v63_v20 = vmul.f32 %v59_v14, %v59_v14  ;;  %v65_v21 = vmul.f32 %v61_v15, %v61_v15 }
  0x95   :  { %v60_v22 = vsub.f32 %v326_v4, %v56_v18  ;;  %v62_v23 = vsub.f32 %v330_v5, %v58_v19  ;;  %v67_v24 = vsel %vm41_vm0, %v63_v20, 0.0  ;;  %v73_v25 = vsel %vm41_vm0, %v65_v21, 0.0  ;;  %v310_v4 = vld [vmem:[%s450_s2] ss:$0 sm:$0xff] }
  0x96   :  { %68 = vadd.xlane.f32.xlu0 %v67_v24 }
  0x97   :  { %v64_v26 = vmul.f32 %v60_v22, %v60_v22  ;;  %v66_v27 = vmul.f32 %v62_v23, %v62_v23 }
  0x99   :  { %v70_v28 = vsel %vm41_vm0, %v64_v26, 0.0  ;;  %v76_v29 = vsel %vm41_vm0, %v66_v27, 0.0 }
  0x9a   :  { %74 = vadd.xlane.f32.xlu0 %v73_v25  ;;  %71 = vadd.xlane.f32.xlu1 %v70_v28 }
  0x9e   :  { %77 = vadd.xlane.f32.xlu1 %v76_v29 }
 0x11f   :  { %v69_v32 = vpop.xlane.xlu0 %68 }
 0x120   :  { %v79_v33 = vmul.f32 0.03125, %v69_v32 }
 0x122   :  { %v83_v34 = vadd.f32 1e-05, %v79_v33 }
 0x123   :  { %v72_v35 = vpop.xlane.xlu1 %71  ;;  %v75_v36 = vpop.xlane.xlu0 %74 }
 0x124   :  { %359 = vrsqrt.f32 %v83_v34  ;;  %v80_v37 = vmul.f32 0.03125, %v72_v35  ;;  %v81_v38 = vmul.f32 0.03125, %v75_v36 }
 0x126   :  { %v84_v39 = vadd.f32 1e-05, %v80_v37  ;;  %v85_v40 = vadd.f32 1e-05, %v81_v38 }
 0x127   :  { %v78_v41 = vpop.xlane.xlu1 %77 }
 0x128   :  { %361 = vrsqrt.f32 %v84_v39  ;;  %v82_v42 = vmul.f32 0.03125, %v78_v41 }
 0x129   :  { %363 = vrsqrt.f32 %v85_v40 }
 0x12a   :  { %v86_v43 = vadd.f32 1e-05, %v82_v42 }
 0x12c   :  { %365 = vrsqrt.f32 %v86_v43 }
 0x131   :  { %v360_v44 = vpop.eup %359 }
 0x132   :  { %v91_v46 = vmul.f32 %v360_v44, %v59_v14 }
 0x134   :  { %v102_v48 = vmul.f32 %v298_v45, %v91_v46 }
 0x135   :  { %v362_v49 = vpop.eup %361 }
 0x136   :  { %v364_v50 = vpop.eup %363  ;;  %v113_v51 = vadd.f32 %v299_v47, %v102_v48  ;;  %v92_v52 = vmul.f32 %v362_v49, %v60_v22 }
 0x137   :  { %v93_v53 = vmul.f32 %v364_v50, %v61_v15 }
 0x138   :  { %v315_v54 = vpack.c.bf16 %v113_v51, %v113_v51  ;;  %v103_v55 = vmul.f32 %v298_v45, %v92_v52 }
 0x139   :  { %v366_v56 = vpop.eup %365  ;;  %v104_v57 = vmul.f32 %v298_v45, %v93_v53 }
 0x13a   :  { %134 = vst.msk [vmem:[#allocation3] sm:$0xf] %vm133_vm1, %v315_v54  ;;  %v114_v58 = vadd.f32 %v299_v47, %v103_v55  ;;  %v94_v59 = vmul.f32 %v366_v56, %v62_v23 }
 0x13b   :  { %v115_v60 = vadd.f32 %v299_v47, %v104_v57 }
 0x13c   :  { %v316_v61 = vpack.c.bf16 %v114_v58, %v114_v58  ;;  %v105_v62 = vmul.f32 %v298_v45, %v94_v59 }
 0x13d   :  { %v317_v63 = vpack.c.bf16 %v115_v60, %v115_v60 }
 0x13e   :  { %135 = vst.msk [vmem:[#allocation3 + $0x4] sm:$0xf] %vm133_vm1, %v316_v61  ;;  %v116_v0 = vadd.f32 %v299_v47, %v105_v62 }
 0x13f   :  { %136 = vst.msk [vmem:[#allocation3 + $0x8] sm:$0xf] %vm133_vm1, %v317_v63 }
 0x140   :  { %v318_v1 = vpack.c.bf16 %v116_v0, %v116_v0 }
 0x142   :  { %137 = vst.msk [vmem:[#allocation3 + $0xc] sm:$0xf] %vm133_vm1, %v318_v1 }
 0x145   :  { %v357_v2 = vld [vmem:[#allocation3] sm:$0xff]  }
 0x146   :  { %351 = vmatprep.mubr.msk.bf16.mxu0 %vm41_vm0, %v357_v2 }
 0x149   :  { %v358_v3 = vld [vmem:[#allocation3 + $0x8] sm:$0xff]  }
 0x14a   :  { %352 = vmatmul.mubr.msk.bf16.vlgmr.msra.gmra.mxu0 %vm41_vm0, %v358_v3 }
 0x20a   :  { %v353_v5 = vpop.f32.mrf.mxu0 }
 0x20b   :  { %v252_v6 = vadd.f32 %v353_v5, %v310_v4 }
 0x20c   :  { %v213_v7 = vpop.f32.mrf.mxu0 }
 0x20d   :  { %v260_v8 = vmul.f32 0.70710677, %v252_v6  ;;  %v250_v9 = vadd.f32 %v310_v4, %v213_v7  ;;  %v256_v21 = vmul.f32 0.5, %v252_v6 }
 0x20e   :  { %v354_v10 = vpop.f32.mrf.mxu0 }
 0x20f   :  { %367 = verf.f32 %v260_v8  ;;  %v258_v11 = vmul.f32 0.70710677, %v250_v9  ;;  %v253_v12 = vadd.f32 %v354_v10, %v310_v4  ;;  %v254_v26 = vmul.f32 0.5, %v250_v9 }
 0x210   :  { %v216_v13 = vpop.f32.mrf.mxu0 }
 0x211   :  { %369 = verf.f32 %v258_v11  ;;  %v261_v14 = vmul.f32 0.70710677, %v253_v12  ;;  %v251_v15 = vadd.f32 %v310_v4, %v216_v13  ;;  %v257_v23 = vmul.f32 0.5, %v253_v12 }
 0x213   :  { %371 = verf.f32 %v261_v14  ;;  %v259_v16 = vmul.f32 0.70710677, %v251_v15  ;;  %v255_v29 = vmul.f32 0.5, %v251_v15 }
 0x215   :  { %373 = verf.f32 %v259_v16 }
 0x21c   :  { %v368_v17 = vpop.eup %367 }
 0x21d   :  { %v268_v19 = vadd.f32 1.0, %v368_v17 }
 0x21e   :  { %v370_v18 = vpop.eup %369 }
 0x21f   :  { %v266_v22 = vadd.f32 1.0, %v370_v18  ;;  %v272_v27 = vmul.f32 %v268_v19, %v256_v21 }
 0x220   :  { %v372_v20 = vpop.eup %371 }
 0x221   :  { %v269_v24 = vadd.f32 1.0, %v372_v20  ;;  %v270_v31 = vmul.f32 %v266_v22, %v254_v26 }
 0x222   :  { %v374_v25 = vpop.eup %373 }
 0x223   :  { %v273_v28 = vmul.f32 %v269_v24, %v257_v23  ;;  %v267_v30 = vadd.f32 1.0, %v374_v25 }
 0x225   :  { %v339_v32 = vpack.c.bf16 %v273_v28, %v272_v27  ;;  %v271_v33 = vmul.f32 %v267_v30, %v255_v29 }
 0x227   :  { %342 = vst [vmem:[%s451_s5 + $0x8] sm:$0xff] %v339_v32   ;;  %v334_v34 = vpack.c.bf16 %v271_v33, %v270_v31 }
 0x229   :  { %335 = vst [vmem:[%s451_s5] sm:$0xff] %v334_v34  }

// kernel: mom_block_fn.9
= control target key start
LH: loop header
LB: loop body
LE: loop exit
PB: predicated region body
PF: predicated region fallthrough
CT: control target
= control target key end

     0   :  { %vm23_vm0 = vcmask 261120   ;;  %v306_v2 = vmov 0.0   ;;  %s389_s0 = inlined_call_operand.vmem [shape: bf16[32,128], index: 0, kind: input, shape index: {}]   ;;  %s390_s1 = inlined_call_operand.vmem [shape: bf16[128,32], index: 1, kind: input, shape index: {}]   ;;  %s391_s2 = inlined_call_operand.vmem [shape: f32[1,32], index: 2, kind: input, shape index: {}]   ;;  %s392_s3 = inlined_call_operand.vmem [shape: bf16[32,32], index: 3, kind: input, shape index: {}]   ;;  %s393_s4 = inlined_call_operand.hbm [shape: f32[32,32], index: 4, kind: output, shape index: {}]  }
   0x1   :  { %v274_v0 = vld [vmem:[%s390_s1 + $0x38] sm:$0xff]   ;;  %v275_v1 = vld [vmem:[%s390_s1 + $0x30] sm:$0xff]   ;;  %26 = vst.msk [vmem:[#allocation2 + $0x10] sm:$0xff] %vm23_vm0, %v306_v2  ;;  %24 = vst.msk [vmem:[#allocation2] sm:$0xff] %vm23_vm0, %v306_v2 }
   0x2   :  { %250 = vmatprep.subr.bf16.mxu0 %v274_v0  ;;  %25 = vst.msk [vmem:[#allocation2 + $0x8] sm:$0xff] %vm23_vm0, %v306_v2  ;;  %27 = vst.msk [vmem:[#allocation2 + $0x18] sm:$0xff] %vm23_vm0, %v306_v2  ;;  %v276_v3 = vld [vmem:[%s390_s1 + $0x28] sm:$0xff]   ;;  %v277_v4 = vld [vmem:[%s390_s1 + $0x20] sm:$0xff]  }
   0x3   :  { %251 = vmatpush3.bf16.msra.mxu0 %v274_v0  ;;  %v282_v5 = vld [vmem:[%s389_s0] sm:$0xff]  }
   0x4   :  { %252 = vmatprep.subr.bf16.mxu0 %v275_v1  ;;  %266 = vmatprep.mubr.bf16.mxu0 %v282_v5 }
   0x7   :  { %253 = vmatpush3.bf16.msra.mxu0 %v275_v1 }
   0x8   :  { %254 = vmatprep.subr.bf16.mxu0 %v276_v3 }
   0x9   :  { %9 = vsyncpa [#allocation4], 0  ;;  %v278_v6 = vld [vmem:[%s390_s1 + $0x18] sm:$0xff]   ;;  %v279_v7 = vld [vmem:[%s390_s1 + $0x10] sm:$0xff]  }
   0xa   :  { %v280_v8 = vld [vmem:[%s390_s1 + $0x8] sm:$0xff]   ;;  %v281_v9 = vld [vmem:[%s390_s1] sm:$0xff]   ;;  %v34_v11 = vld [vmem:[#allocation2 + $0x10] sm:$0xff] }
   0xb   :  { %255 = vmatpush3.bf16.msra.mxu0 %v276_v3  ;;  %v283_v10 = vld [vmem:[%s389_s0 + $0x8] sm:$0xff]   ;;  %v32_v13 = vld [vmem:[#allocation2] sm:$0xff]  ;;  %v35_v16 = vld [vmem:[#allocation2 + $0x18] sm:$0xff] }
   0xc   :  { %256 = vmatprep.subr.bf16.mxu0 %v277_v4  ;;  %v33_v19 = vld [vmem:[#allocation2 + $0x8] sm:$0xff]  ;;  %v230_v24 = vld [vmem:[%s391_s2] ss:$0 sm:$0xff]  ;;  %s307_s2 = smov [#allocation3]  }
   0xd   :  { %v239_v22 = vld [vmem:[%s392_s3 + $0x8] sm:$0xff]   ;;  %v232_v25 = vld [vmem:[%s392_s3] sm:$0xff]   ;;  %s209_s13 = sshll.u32 %s307_s2, 4  ;;  %s210_s13 = int_to_ptr.vmem [resolvable:$true] %s209_s13 }
   0xe   :  { %v237_v26 = vunpack.c.l.bf16 %v239_v22  ;;  %v233_v29 = vunpack.c.l.bf16 %v232_v25  ;;  %v238_v32 = vunpack.c.h.bf16 %v239_v22  ;;  %v234_v36 = vunpack.c.h.bf16 %v232_v25  ;;  %s284_s3 = scalar_lea.vmem %s210_s13, 512  ;;  %p289_p1 = scmp.lt.s32.totalorder %s210_s13, %s210_s13 }
   0xf   :  { %257 = vmatpush3.bf16.msra.mxu0 %v277_v4  ;;  %p285_p0 = scmp.ne.s32.totalorder %s210_s13, %s284_s3  ;;  %p290_p2 = scmp.lt.s32.totalorder %s284_s3, %s284_s3 }
  0x10   :  { %258 = vmatprep.subr.bf16.mxu0 %v278_v6 }
  0x11   :  { %p291_p3 = por %p290_p2, %p289_p1 }
  0x13   :  { %259 = vmatpush3.bf16.msra.mxu0 %v278_v6  ;;  %p292_p4 = pnand %p291_p3, %p285_p0 }
  0x14   :  { %260 = vmatprep.subr.bf16.mxu0 %v279_v7 }
  0x17   :  { %261 = vmatpush3.bf16.msra.mxu0 %v279_v7 }
  0x18   :  { %262 = vmatprep.subr.bf16.mxu0 %v280_v8 }
  0x1b   :  { %263 = vmatpush3.bf16.msra.mxu0 %v280_v8 }
  0x1c   :  { %264 = vmatprep.subr.bf16.mxu0 %v281_v9 }
  0x1f   :  { %265 = vmatpush3.bf16.msra.mxu0 %v281_v9 }
  0x22   :  { %267 = vmatmul.mubr.bf16.vlgmr.msra.gmra.mxu0 %v283_v10 }
  0xe2   :  { %v268_v12 = vpop.f32.mrf.mxu0 }
  0xe3   :  { %v163_v14 = vadd.f32 %v268_v12, %v34_v11 }
  0xe4   :  { %v146_v15 = vpop.f32.mrf.mxu0 }
  0xe5   :  { %168 = vst.msk [vmem:[#allocation2 + $0x10] sm:$0xff] %vm23_vm0, %v163_v14  ;;  %v161_v17 = vadd.f32 %v146_v15, %v32_v13 }
  0xe6   :  { %v269_v18 = vpop.f32.mrf.mxu0 }
  0xe7   :  { %166 = vst.msk [vmem:[#allocation2] sm:$0xff] %vm23_vm0, %v161_v17  ;;  %v164_v20 = vadd.f32 %v269_v18, %v35_v16 }
  0xe8   :  { %v149_v21 = vpop.f32.mrf.mxu0 }
  0xe9   :  { %169 = vst.msk [vmem:[#allocation2 + $0x18] sm:$0xff] %vm23_vm0, %v164_v20  ;;  %v162_v23 = vadd.f32 %v149_v21, %v33_v19 }
  0xeb   :  { %167 = vst.msk [vmem:[#allocation2 + $0x8] sm:$0xff] %vm23_vm0, %v162_v23 }
  0xec   :  { %v175_v27 = vld [vmem:[#allocation2 + $0x10] sm:$0xff] }
  0xed   :  { %v186_v28 = vadd.f32 %v230_v24, %v175_v27 }
  0xee   :  { %v173_v30 = vld [vmem:[#allocation2] sm:$0xff] }
  0xef   :  { %v184_v31 = vadd.f32 %v230_v24, %v173_v30  ;;  %v198_v33 = vadd.f32 %v237_v26, %v186_v28 }
  0xf0   :  { %v176_v34 = vld [vmem:[#allocation2 + $0x18] sm:$0xff] }
  0xf1   :  { %v187_v35 = vadd.f32 %v230_v24, %v176_v34  ;;  %v196_v37 = vadd.f32 %v233_v29, %v184_v31  ;;  %202 = vst.msk [vmem:[#allocation3 + $0x10] sm:$0xff] %vm23_vm0, %v198_v33 }
  0xf2   :  { %v174_v38 = vld [vmem:[#allocation2 + $0x8] sm:$0xff] }
  0xf3   :  { %v185_v39 = vadd.f32 %v230_v24, %v174_v38  ;;  %v199_v40 = vadd.f32 %v238_v32, %v187_v35  ;;  %200 = vst.msk [vmem:[#allocation3] sm:$0xff] %vm23_vm0, %v196_v37 }
  0xf5   :  { %v197_v41 = vadd.f32 %v234_v36, %v185_v39  ;;  %203 = vst.msk [vmem:[#allocation3 + $0x18] sm:$0xff] %vm23_vm0, %v199_v40 }
  0xf7   :  { %201 = vst.msk [vmem:[#allocation3 + $0x8] sm:$0xff] %vm23_vm0, %v197_v41 }
  0xf8   :  { %295 = shalt.err (!%p292_p4)
}
  0xf9   :  { %s308_s14 = smov 128   ;;  %s309_s15 = smov 8  }
  0xfa   :  { %215 = dma.vmem_to_hbm [thread:$0]  %s210_s13, 512, %s393_s4, [#allocation4], %s308_s14, %s308_s14, %s309_s15  }
  0xfb   :  { %304 = dma.done.wait [#allocation4], 512  }
  0xfc   :  { %305 = vsyncadd [#allocation4], 4294966784 }
  0xfd   :  { %219 = vsyncpa [#allocation4], 1 }

</bundles_post_ra>
